<compile_context>
chip_gen: v7x
topology: tpu7x:2x2x1
jax: 0.10.0
libtpu: 0.0.40
codegen_flags: <defaults>
</compile_context>

<pallas_src>
import functools
import jax
import jax.numpy as jnp
from jax.experimental import pallas as pl
from jax.experimental.pallas import tpu as pltpu


def _layernorm_f32(x, gamma, beta, eps=1e-5):
    """Row-wise LayerNorm with f32 statistics (PyTorch default eps=1e-5)."""
    xf = x.astype(jnp.float32)
    mean = jnp.mean(xf, axis=-1, keepdims=True)
    var = jnp.mean((xf - mean) ** 2, axis=-1, keepdims=True)
    return ((xf - mean) * jax.lax.rsqrt(var + eps) * gamma.astype(jnp.float32)
            + beta.astype(jnp.float32))


def mhsa_kernel(x_ref,
                wq_ref, bq_ref, wk_ref, bk_ref, wv_ref, bv_ref,
                wo_ref, bo_ref,
                g1_ref, b1_ref, g2_ref, b2_ref,
                o_ref,
                xn_sc, k_sc, v_sc,
                *, num_heads, head_dim, q_tile):
    qi = pl.program_id(1)
    seq = x_ref.shape[1]
    dim = num_heads * head_dim
    cdtype = wq_ref.dtype            # bf16 compute dtype for MXU operands

    # ---- once per batch: full-sequence norm1 + K/V projections into scratch ----
    @pl.when(qi == 0)
    def _():
        xn = _layernorm_f32(x_ref[0], g1_ref[...], b1_ref[...]).astype(cdtype)   # (S, D)
        xn_sc[...] = xn
        k_sc[...] = (jnp.dot(xn, wk_ref[...], preferred_element_type=jnp.float32)
                     + bk_ref[...]).astype(cdtype)                               # (S, D)
        v_sc[...] = (jnp.dot(xn, wv_ref[...], preferred_element_type=jnp.float32)
                     + bv_ref[...]).astype(cdtype)                               # (S, D)

    # ---- per q-tile: slice resident rows, Q projection (scale pre-folded) ----
    row0 = pl.multiple_of(qi * q_tile, q_tile)
    xn_q = xn_sc[pl.ds(row0, q_tile), :]                                         # (TQ, D) bf16
    q = (jnp.dot(xn_q, wq_ref[...], preferred_element_type=jnp.float32)
         + bq_ref[...]).astype(cdtype)                                           # (TQ, D)

    # ---- batched multi-head attention (head_dim=16 is lane-sparse; see notes) ----
    qh = q.reshape(q_tile, num_heads, head_dim).transpose(1, 0, 2)               # (H, TQ, hd)
    kh = k_sc[...].reshape(seq, num_heads, head_dim).transpose(1, 0, 2)          # (H, S, hd)
    vh = v_sc[...].reshape(seq, num_heads, head_dim).transpose(1, 0, 2)          # (H, S, hd)

    scores = jnp.einsum("hqd,hkd->hqk", qh, kh,
                        preferred_element_type=jnp.float32)                      # (H, TQ, S)
    scores = scores - jnp.max(scores, axis=-1, keepdims=True)
    p = jnp.exp(scores)
    p = p * pl.reciprocal(jnp.sum(p, axis=-1, keepdims=True), approx=True)

    ctx = jnp.einsum("hqk,hkd->hqd", p.astype(cdtype), vh,
                     preferred_element_type=jnp.float32)                         # (H, TQ, hd)
    attn = ctx.transpose(1, 0, 2).reshape(q_tile, dim).astype(cdtype)            # (TQ, D)

    # ---- output projection + residual + norm2 (f32) ----
    out = jnp.dot(attn, wo_ref[...], preferred_element_type=jnp.float32) + bo_ref[...]
    x_rows = x_ref[0, pl.ds(row0, q_tile), :].astype(jnp.float32)                # residual rows
    out = _layernorm_f32(out + x_rows, g2_ref[...], b2_ref[...])
    o_ref[0] = out.astype(o_ref.dtype)


def prepare_params(params, *, num_heads, compute_dtype=jnp.bfloat16):
    """One-time host-side prep: fold the attention scale into the Q projection
    and cast the matmul weights to the MXU compute dtype (biases / LN stay f32)."""
    dim = params["wq"].shape[0]
    head_dim = dim // num_heads
    scale = head_dim ** (-0.5) * 0.5
    return {
        "wq": (params["wq"] * scale).astype(compute_dtype),
        "bq": params["bq"] * scale,
        "wk": params["wk"].astype(compute_dtype), "bk": params["bk"],
        "wv": params["wv"].astype(compute_dtype), "bv": params["bv"],
        "wo": params["wo"].astype(compute_dtype), "bo": params["bo"],
        "g1": params["g1"], "b1": params["b1"],
        "g2": params["g2"], "b2": params["b2"],
    }


def _vmem_budget_bytes(S, D, q_tile, num_heads, wbytes):
    weights = 4 * D * D * wbytes * 2          # 4 proj matrices, double-buffered
    small = 10 * D * 4 * 2                    # biases + LN params
    x_blk = S * D * 4 * 2                     # full-seq input block (f32, 2 bufs)
    out_blk = q_tile * D * 4 * 2
    scratch = 3 * S * D * wbytes              # xn / k / v scratch
    scores = 2 * num_heads * q_tile * S * 4   # scores + exp copy (f32)
    tmps = 6 * q_tile * D * 4
    est = int((weights + small + x_blk + out_blk + scratch + scores + tmps) * 1.5)
    return max(32 * 1024 * 1024, min(est, 100 * 1024 * 1024))


def multi_head_self_attention(x, params, *, num_heads, q_tile=128):
    """params must come from prepare_params (scale folded, bf16 weights)."""
    B, S, D = x.shape
    assert D % num_heads == 0, "dim must be divisible by num_heads"
    head_dim = D // num_heads

    q_tile = min(q_tile, S)
    # Bound the (H, TQ, S) f32 scores slab (matters on v7x's 64 MiB VMEM).
    while (q_tile > 8 and S % (q_tile // 2) == 0
           and 2 * num_heads * q_tile * S * 4 > 24 * 1024 * 1024):
        q_tile //= 2
    assert S % q_tile == 0, "sequence length must be divisible by q_tile"
    num_q_tiles = S // q_tile

    cdtype = params["wq"].dtype
    wbytes = jnp.dtype(cdtype).itemsize

    kernel = functools.partial(mhsa_kernel, num_heads=num_heads,
                               head_dim=head_dim, q_tile=q_tile)

    # Single x stream: full-sequence block, batch-indexed only (no re-DMA over qi).
    x_spec = pl.BlockSpec((1, S, D), lambda b, qi: (b, 0, 0))
    # Weights/biases are grid-invariant (constant block index → no re-DMA).
    mat_spec = pl.BlockSpec((D, D), lambda b, qi: (0, 0))
    vec_spec = pl.BlockSpec((1, D), lambda b, qi: (0, 0))

    cost = pl.CostEstimate(
        flops=8 * B * S * D * D + 4 * B * S * S * D,
        transcendentals=B * num_heads * S * S,
        bytes_accessed=2 * B * S * D * 4 + 4 * D * D * wbytes + 10 * D * 4,
    )

    return pl.pallas_call(
        kernel,
        out_shape=jax.ShapeDtypeStruct((B, S, D), x.dtype),
        grid_spec=pltpu.PrefetchScalarGridSpec(
            num_scalar_prefetch=0,
            grid=(B, num_q_tiles),
            in_specs=[
                x_spec,
                mat_spec, vec_spec,   # q_proj (pre-scaled, bf16)
                mat_spec, vec_spec,   # k_proj
                mat_spec, vec_spec,   # v_proj
                mat_spec, vec_spec,   # out_proj
                vec_spec, vec_spec,   # norm1 gamma/beta
                vec_spec, vec_spec,   # norm2 gamma/beta
            ],
            out_specs=pl.BlockSpec((1, q_tile, D), lambda b, qi: (b, qi, 0)),
            scratch_shapes=[
                pltpu.VMEM((S, D), cdtype),   # xn (norm1 of full sequence)
                pltpu.VMEM((S, D), cdtype),   # K
                pltpu.VMEM((S, D), cdtype),   # V
            ],
        ),
        compiler_params=pltpu.CompilerParams(
            # batch parallel (megacore); q-tile axis must be serial so the
            # pl.when(qi==0) K/V scratch is valid for later q-tiles.
            dimension_semantics=("parallel", "arbitrary"),
            vmem_limit_bytes=_vmem_budget_bytes(S, D, q_tile, num_heads, wbytes),
        ),
        cost_estimate=cost,
    )(x,
      params["wq"], params["bq"], params["wk"], params["bk"],
      params["wv"], params["bv"], params["wo"], params["bo"],
      params["g1"], params["b1"], params["g2"], params["b2"])


def init_params(key, dim):
    """Deterministic synthetic init (xavier_uniform with gain=0.02 for weights)."""
    keys = jax.random.split(key, 8)
    limit = 0.02 * (6.0 / (dim + dim)) ** 0.5

    def w(k):
        # stored as (D_in, D_out) == torch weight (out, in) transposed
        return jax.random.uniform(k, (dim, dim), jnp.float32, -limit, limit)

    def b(k):
        bound = 1.0 / (dim ** 0.5)
        return jax.random.uniform(k, (1, dim), jnp.float32, -bound, bound)

    return {
        "wq": w(keys[0]), "bq": b(keys[1]),
        "wk": w(keys[2]), "bk": b(keys[3]),
        "wv": w(keys[4]), "bv": b(keys[5]),
        "wo": w(keys[6]), "bo": b(keys[7]),
        "g1": jnp.ones((1, dim), jnp.float32), "b1": jnp.zeros((1, dim), jnp.float32),
        "g2": jnp.ones((1, dim), jnp.float32), "b2": jnp.zeros((1, dim), jnp.float32),
    }


def reference(x, p, num_heads):
    """Pure-JAX f32 reference matching the PyTorch forward semantics."""
    B, S, D = x.shape
    hd = D // num_heads
    scale = hd ** (-0.5) * 0.5
    xn = _layernorm_f32(x, p["g1"], p["b1"])
    q = (xn @ p["wq"] + p["bq"]) * scale
    k = xn @ p["wk"] + p["bk"]
    v = xn @ p["wv"] + p["bv"]
    q = q.reshape(B, S, num_heads, hd).transpose(0, 2, 1, 3)
    k = k.reshape(B, S, num_heads, hd).transpose(0, 2, 1, 3)
    v = v.reshape(B, S, num_heads, hd).transpose(0, 2, 1, 3)
    s = jnp.einsum("bhqd,bhkd->bhqk", q, k)
    s = s - jnp.max(s, axis=-1, keepdims=True)
    pr = jax.nn.softmax(s, axis=-1)
    o = jnp.einsum("bhqk,bhkd->bhqd", pr, v).transpose(0, 2, 1, 3).reshape(B, S, D)
    o = o @ p["wo"] + p["bo"]
    return _layernorm_f32(o + x, p["g2"], p["b2"])


if __name__ == "__main__":
    # Small but TPU-friendly shapes: lane-dense feature dim (D = 128).
    B, S, D, H = 2, 16, 128, 8
    key = jax.random.PRNGKey(0)
    kx, kp = jax.random.split(key)
    x = jax.random.normal(kx, (B, S, D), jnp.float32)
    params = init_params(kp, D)

    # One-time host-side parameter prep (scale folding + bf16 cast).
    prepped = prepare_params(params, num_heads=H)

    out = multi_head_self_attention(x, prepped, num_heads=H)
    out = jax.block_until_ready(out)

    ref = reference(x, params, H)
    assert out.shape == (B, S, D)
    # tolerance accounts for bf16 MXU operands + pl.reciprocal(approx=True)
    assert jnp.allclose(out, ref, atol=2e-2, rtol=2e-2), "mismatch vs. JAX reference"
    print("KERNEL_OK")
</pallas_src>

<mosaic_0001>
module attributes {stable_mosaic.version = 11 : i64} {
  func.func @mhsa_kernel(%arg0: i32, %arg1: i32, %arg2: memref<1x16x128xf32, #tpu.memory_space<vmem>>, %arg3: memref<128x128xbf16, #tpu.memory_space<vmem>>, %arg4: memref<1x128xf32, #tpu.memory_space<vmem>>, %arg5: memref<128x128xbf16, #tpu.memory_space<vmem>>, %arg6: memref<1x128xf32, #tpu.memory_space<vmem>>, %arg7: memref<128x128xbf16, #tpu.memory_space<vmem>>, %arg8: memref<1x128xf32, #tpu.memory_space<vmem>>, %arg9: memref<128x128xbf16, #tpu.memory_space<vmem>>, %arg10: memref<1x128xf32, #tpu.memory_space<vmem>>, %arg11: memref<1x128xf32, #tpu.memory_space<vmem>>, %arg12: memref<1x128xf32, #tpu.memory_space<vmem>>, %arg13: memref<1x128xf32, #tpu.memory_space<vmem>>, %arg14: memref<1x128xf32, #tpu.memory_space<vmem>>, %arg15: memref<1x16x128xf32, #tpu.memory_space<vmem>>, %arg16: memref<16x128xbf16, #tpu.memory_space<vmem>>, %arg17: memref<16x128xbf16, #tpu.memory_space<vmem>>, %arg18: memref<16x128xbf16, #tpu.memory_space<vmem>>) attributes {dimension_semantics = [#tpu.dimension_semantics<parallel>, #tpu.dimension_semantics<arbitrary>], iteration_bounds = array<i64: 2, 1>, scalar_prefetch = 0 : i64, scratch_operands = 3 : i64, tpu.core_type = #tpu.core_type<tc>, window_params = [{transform_indices = @transform_0, window_bounds = array<i64: 1, 16, 128>}, {pipeline_mode = #tpu.pipeline_mode<synchronous>, transform_indices = @transform_1, window_bounds = array<i64: 128, 128>}, {pipeline_mode = #tpu.pipeline_mode<synchronous>, transform_indices = @transform_2, window_bounds = array<i64: 1, 128>}, {pipeline_mode = #tpu.pipeline_mode<synchronous>, transform_indices = @transform_3, window_bounds = array<i64: 128, 128>}, {pipeline_mode = #tpu.pipeline_mode<synchronous>, transform_indices = @transform_4, window_bounds = array<i64: 1, 128>}, {pipeline_mode = #tpu.pipeline_mode<synchronous>, transform_indices = @transform_5, window_bounds = array<i64: 128, 128>}, {pipeline_mode = #tpu.pipeline_mode<synchronous>, transform_indices = @transform_6, window_bounds = array<i64: 1, 128>}, {pipeline_mode = #tpu.pipeline_mode<synchronous>, transform_indices = @transform_7, window_bounds = array<i64: 128, 128>}, {pipeline_mode = #tpu.pipeline_mode<synchronous>, transform_indices = @transform_8, window_bounds = array<i64: 1, 128>}, {pipeline_mode = #tpu.pipeline_mode<synchronous>, transform_indices = @transform_9, window_bounds = array<i64: 1, 128>}, {pipeline_mode = #tpu.pipeline_mode<synchronous>, transform_indices = @transform_10, window_bounds = array<i64: 1, 128>}, {pipeline_mode = #tpu.pipeline_mode<synchronous>, transform_indices = @transform_11, window_bounds = array<i64: 1, 128>}, {pipeline_mode = #tpu.pipeline_mode<synchronous>, transform_indices = @transform_12, window_bounds = array<i64: 1, 128>}, {transform_indices = @transform_13, window_bounds = array<i64: 1, 16, 128>}]} {
    %c0_i32 = arith.constant 0 : i32
    %0 = arith.cmpi eq, %arg1, %c0_i32 : i32
    %1 = arith.extui %0 : i1 to i32
    %c0_i32_0 = arith.constant 0 : i32
    %2 = arith.cmpi ne, %1, %c0_i32_0 : i32
    scf.if %2 {
      %c0_32 = arith.constant 0 : index
      %c0_33 = arith.constant 0 : index
      %c0_34 = arith.constant 0 : index
      %73 = vector.load %arg2[%c0_32, %c0_33, %c0_34] : memref<1x16x128xf32, #tpu.memory_space<vmem>>, vector<1x16x128xf32>
      %74 = vector.shape_cast %73 : vector<1x16x128xf32> to vector<16x128xf32>
      %c0_35 = arith.constant 0 : index
      %c0_36 = arith.constant 0 : index
      %75 = vector.load %arg11[%c0_35, %c0_36] : memref<1x128xf32, #tpu.memory_space<vmem>>, vector<1x128xf32>
      %c0_37 = arith.constant 0 : index
      %c0_38 = arith.constant 0 : index
      %76 = vector.load %arg12[%c0_37, %c0_38] : memref<1x128xf32, #tpu.memory_space<vmem>>, vector<1x128xf32>
      %cst_39 = arith.constant dense<0.000000e+00> : vector<16xf32>
      %77 = vector.multi_reduction <add>, %74, %cst_39 [1] : vector<16x128xf32> to vector<16xf32>
      %78 = vector.shape_cast %77 : vector<16xf32> to vector<16x1xf32>
      %cst_40 = arith.constant 1.280000e+02 : f32
      %79 = vector.broadcast %cst_40 : f32 to vector<16x1xf32>
      %80 = arith.divf %78, %79 : vector<16x1xf32>
      %81 = vector.broadcast %80 : vector<16x1xf32> to vector<16x128xf32>
      %82 = arith.subf %74, %81 : vector<16x128xf32>
      %83 = arith.mulf %82, %82 : vector<16x128xf32>
      %cst_41 = arith.constant dense<0.000000e+00> : vector<16xf32>
      %84 = vector.multi_reduction <add>, %83, %cst_41 [1] : vector<16x128xf32> to vector<16xf32>
      %85 = vector.shape_cast %84 : vector<16xf32> to vector<16x1xf32>
      %cst_42 = arith.constant 1.280000e+02 : f32
      %86 = vector.broadcast %cst_42 : f32 to vector<16x1xf32>
      %87 = arith.divf %85, %86 : vector<16x1xf32>
      %88 = vector.broadcast %80 : vector<16x1xf32> to vector<16x128xf32>
      %89 = arith.subf %74, %88 : vector<16x128xf32>
      %cst_43 = arith.constant 9.99999974E-6 : f32
      %90 = vector.broadcast %cst_43 : f32 to vector<16x1xf32>
      %91 = arith.addf %87, %90 : vector<16x1xf32>
      %92 = math.rsqrt %91 : vector<16x1xf32>
      %93 = vector.broadcast %92 : vector<16x1xf32> to vector<16x128xf32>
      %94 = arith.mulf %89, %93 : vector<16x128xf32>
      %95 = vector.broadcast %75 : vector<1x128xf32> to vector<16x128xf32>
      %96 = arith.mulf %94, %95 : vector<16x128xf32>
      %97 = vector.broadcast %76 : vector<1x128xf32> to vector<16x128xf32>
      %98 = arith.addf %96, %97 : vector<16x128xf32>
      %99 = arith.truncf %98 : vector<16x128xf32> to vector<16x128xbf16>
      %c0_44 = arith.constant 0 : index
      %c0_45 = arith.constant 0 : index
      %100 = vector.load %arg16[%c0_44, %c0_45] : memref<16x128xbf16, #tpu.memory_space<vmem>>, vector<16x128xbf16>
      tpu.vector_store %arg16[%c0_44, %c0_45], %99 {strides = array<i32>} : memref<16x128xbf16, #tpu.memory_space<vmem>>, vector<16x128xbf16>,
      %c0_46 = arith.constant 0 : index
      %c0_47 = arith.constant 0 : index
      %101 = vector.load %arg5[%c0_46, %c0_47] : memref<128x128xbf16, #tpu.memory_space<vmem>>, vector<128x128xbf16>
      %cst_48 = arith.constant dense<0.000000e+00> : vector<16x128xf32>
      %102 = tpu.matmul %99, %101, %cst_48 {dimension_numbers = #tpu.dot_dimension_numbers<[1], [0], [0], [1], [0, 0, 1, 1], [], []>} : vector<16x128xbf16>, vector<128x128xbf16>, vector<16x128xf32> -> vector<16x128xf32>
      %c0_49 = arith.constant 0 : index
      %c0_50 = arith.constant 0 : index
      %103 = vector.load %arg6[%c0_49, %c0_50] : memref<1x128xf32, #tpu.memory_space<vmem>>, vector<1x128xf32>
      %104 = vector.broadcast %103 : vector<1x128xf32> to vector<16x128xf32>
      %105 = arith.addf %102, %104 : vector<16x128xf32>
      %106 = arith.truncf %105 : vector<16x128xf32> to vector<16x128xbf16>
      %c0_51 = arith.constant 0 : index
      %c0_52 = arith.constant 0 : index
      %107 = vector.load %arg17[%c0_51, %c0_52] : memref<16x128xbf16, #tpu.memory_space<vmem>>, vector<16x128xbf16>
      tpu.vector_store %arg17[%c0_51, %c0_52], %106 {strides = array<i32>} : memref<16x128xbf16, #tpu.memory_space<vmem>>, vector<16x128xbf16>,
      %c0_53 = arith.constant 0 : index
      %c0_54 = arith.constant 0 : index
      %108 = vector.load %arg7[%c0_53, %c0_54] : memref<128x128xbf16, #tpu.memory_space<vmem>>, vector<128x128xbf16>
      %cst_55 = arith.constant dense<0.000000e+00> : vector<16x128xf32>
      %109 = tpu.matmul %99, %108, %cst_55 {dimension_numbers = #tpu.dot_dimension_numbers<[1], [0], [0], [1], [0, 0, 1, 1], [], []>} : vector<16x128xbf16>, vector<128x128xbf16>, vector<16x128xf32> -> vector<16x128xf32>
      %c0_56 = arith.constant 0 : index
      %c0_57 = arith.constant 0 : index
      %110 = vector.load %arg8[%c0_56, %c0_57] : memref<1x128xf32, #tpu.memory_space<vmem>>, vector<1x128xf32>
      %111 = vector.broadcast %110 : vector<1x128xf32> to vector<16x128xf32>
      %112 = arith.addf %109, %111 : vector<16x128xf32>
      %113 = arith.truncf %112 : vector<16x128xf32> to vector<16x128xbf16>
      %c0_58 = arith.constant 0 : index
      %c0_59 = arith.constant 0 : index
      %114 = vector.load %arg18[%c0_58, %c0_59] : memref<16x128xbf16, #tpu.memory_space<vmem>>, vector<16x128xbf16>
      tpu.vector_store %arg18[%c0_58, %c0_59], %113 {strides = array<i32>} : memref<16x128xbf16, #tpu.memory_space<vmem>>, vector<16x128xbf16>,
    } else {
    }
    %c16_i32 = arith.constant 16 : i32
    %3 = arith.muli %arg1, %c16_i32 : i32
    %4 = tpu.assume_multiple %3, 16 : i32
    %5 = arith.index_cast %4 : i32 to index
    %c0 = arith.constant 0 : index
    %6 = vector.load %arg16[%5, %c0] : memref<16x128xbf16, #tpu.memory_space<vmem>>, vector<16x128xbf16>
    %c0_1 = arith.constant 0 : index
    %c0_2 = arith.constant 0 : index
    %7 = vector.load %arg3[%c0_1, %c0_2] : memref<128x128xbf16, #tpu.memory_space<vmem>>, vector<128x128xbf16>
    %cst = arith.constant dense<0.000000e+00> : vector<16x128xf32>
    %8 = tpu.matmul %6, %7, %cst {dimension_numbers = #tpu.dot_dimension_numbers<[1], [0], [0], [1], [0, 0, 1, 1], [], []>} : vector<16x128xbf16>, vector<128x128xbf16>, vector<16x128xf32> -> vector<16x128xf32>
    %c0_3 = arith.constant 0 : index
    %c0_4 = arith.constant 0 : index
    %9 = vector.load %arg4[%c0_3, %c0_4] : memref<1x128xf32, #tpu.memory_space<vmem>>, vector<1x128xf32>
    %10 = vector.broadcast %9 : vector<1x128xf32> to vector<16x128xf32>
    %11 = arith.addf %8, %10 : vector<16x128xf32>
    %12 = arith.truncf %11 : vector<16x128xf32> to vector<16x128xbf16>
    %13 = vector.shape_cast %12 : vector<16x128xbf16> to vector<16x8x16xbf16>
    %14 = tpu.transpose %13, [1, 0, 2] : vector<16x8x16xbf16> -> vector<8x16x16xbf16>
    %c0_5 = arith.constant 0 : index
    %c0_6 = arith.constant 0 : index
    %15 = vector.load %arg17[%c0_5, %c0_6] : memref<16x128xbf16, #tpu.memory_space<vmem>>, vector<16x128xbf16>
    %16 = vector.shape_cast %15 : vector<16x128xbf16> to vector<16x8x16xbf16>
    %17 = tpu.transpose %16, [1, 0, 2] : vector<16x8x16xbf16> -> vector<8x16x16xbf16>
    %c0_7 = arith.constant 0 : index
    %c0_8 = arith.constant 0 : index
    %18 = vector.load %arg18[%c0_7, %c0_8] : memref<16x128xbf16, #tpu.memory_space<vmem>>, vector<16x128xbf16>
    %19 = vector.shape_cast %18 : vector<16x128xbf16> to vector<16x8x16xbf16>
    %20 = tpu.transpose %19, [1, 0, 2] : vector<16x8x16xbf16> -> vector<8x16x16xbf16>
    "tpu.trace_start"() <{level = 10 : i32, message = "hqd,hkd->hqk"}> : () -> ()
    %cst_9 = arith.constant dense<0.000000e+00> : vector<8x16x16xf32>
    %21 = tpu.matmul %14, %17, %cst_9 {dimension_numbers = #tpu.dot_dimension_numbers<[2], [2], [1], [1], [0, 0, 0, 1, 1, 1], [0], [0]>} : vector<8x16x16xbf16>, vector<8x16x16xbf16>, vector<8x16x16xf32> -> vector<8x16x16xf32>
    "tpu.trace_stop"() : () -> ()
    %cst_10 = arith.constant dense<0xFF800000> : vector<8x16xf32>
    %22 = vector.multi_reduction <maximumf>, %21, %cst_10 [2] : vector<8x16x16xf32> to vector<8x16xf32>
    %23 = vector.shape_cast %22 : vector<8x16xf32> to vector<8x16x1xf32>
    %24 = vector.broadcast %23 : vector<8x16x1xf32> to vector<8x16x16xf32>
    %25 = arith.subf %21, %24 : vector<8x16x16xf32>
    %26 = math.exp %25 : vector<8x16x16xf32>
    %cst_11 = arith.constant dense<0.000000e+00> : vector<8x16xf32>
    %27 = vector.multi_reduction <add>, %26, %cst_11 [2] : vector<8x16x16xf32> to vector<8x16xf32>
    %28 = vector.shape_cast %27 : vector<8x16xf32> to vector<8x16x1xf32>
    %29 = tpu.reciprocal %28 {approx = true} : vector<8x16x1xf32> -> vector<8x16x1xf32>
    %30 = vector.broadcast %29 : vector<8x16x1xf32> to vector<8x16x16xf32>
    %31 = arith.mulf %26, %30 : vector<8x16x16xf32>
    %32 = arith.truncf %31 : vector<8x16x16xf32> to vector<8x16x16xbf16>
    "tpu.trace_start"() <{level = 10 : i32, message = "hqk,hkd->hqd"}> : () -> ()
    %cst_12 = arith.constant dense<0.000000e+00> : vector<8x16x16xf32>
    %33 = tpu.matmul %32, %20, %cst_12 {dimension_numbers = #tpu.dot_dimension_numbers<[2], [1], [1], [2], [0, 0, 0, 1, 1, 2], [0], [0]>} : vector<8x16x16xbf16>, vector<8x16x16xbf16>, vector<8x16x16xf32> -> vector<8x16x16xf32>
    "tpu.trace_stop"() : () -> ()
    %34 = tpu.transpose %33, [1, 0, 2] : vector<8x16x16xf32> -> vector<16x8x16xf32>
    %35 = vector.shape_cast %34 : vector<16x8x16xf32> to vector<16x128xf32>
    %36 = arith.truncf %35 : vector<16x128xf32> to vector<16x128xbf16>
    %c0_13 = arith.constant 0 : index
    %c0_14 = arith.constant 0 : index
    %37 = vector.load %arg9[%c0_13, %c0_14] : memref<128x128xbf16, #tpu.memory_space<vmem>>, vector<128x128xbf16>
    %cst_15 = arith.constant dense<0.000000e+00> : vector<16x128xf32>
    %38 = tpu.matmul %36, %37, %cst_15 {dimension_numbers = #tpu.dot_dimension_numbers<[1], [0], [0], [1], [0, 0, 1, 1], [], []>} : vector<16x128xbf16>, vector<128x128xbf16>, vector<16x128xf32> -> vector<16x128xf32>
    %c0_16 = arith.constant 0 : index
    %c0_17 = arith.constant 0 : index
    %39 = vector.load %arg10[%c0_16, %c0_17] : memref<1x128xf32, #tpu.memory_space<vmem>>, vector<1x128xf32>
    %40 = vector.broadcast %39 : vector<1x128xf32> to vector<16x128xf32>
    %41 = arith.addf %38, %40 : vector<16x128xf32>
    %c0_18 = arith.constant 0 : index
    %42 = arith.index_cast %4 : i32 to index
    %c0_19 = arith.constant 0 : index
    %43 = vector.load %arg2[%c0_18, %42, %c0_19] : memref<1x16x128xf32, #tpu.memory_space<vmem>>, vector<1x16x128xf32>
    %44 = vector.shape_cast %43 : vector<1x16x128xf32> to vector<16x128xf32>
    %45 = arith.addf %41, %44 : vector<16x128xf32>
    %c0_20 = arith.constant 0 : index
    %c0_21 = arith.constant 0 : index
    %46 = vector.load %arg13[%c0_20, %c0_21] : memref<1x128xf32, #tpu.memory_space<vmem>>, vector<1x128xf32>
    %c0_22 = arith.constant 0 : index
    %c0_23 = arith.constant 0 : index
    %47 = vector.load %arg14[%c0_22, %c0_23] : memref<1x128xf32, #tpu.memory_space<vmem>>, vector<1x128xf32>
    %cst_24 = arith.constant dense<0.000000e+00> : vector<16xf32>
    %48 = vector.multi_reduction <add>, %45, %cst_24 [1] : vector<16x128xf32> to vector<16xf32>
    %49 = vector.shape_cast %48 : vector<16xf32> to vector<16x1xf32>
    %cst_25 = arith.constant 1.280000e+02 : f32
    %50 = vector.broadcast %cst_25 : f32 to vector<16x1xf32>
    %51 = arith.divf %49, %50 : vector<16x1xf32>
    %52 = vector.broadcast %51 : vector<16x1xf32> to vector<16x128xf32>
    %53 = arith.subf %45, %52 : vector<16x128xf32>
    %54 = arith.mulf %53, %53 : vector<16x128xf32>
    %cst_26 = arith.constant dense<0.000000e+00> : vector<16xf32>
    %55 = vector.multi_reduction <add>, %54, %cst_26 [1] : vector<16x128xf32> to vector<16xf32>
    %56 = vector.shape_cast %55 : vector<16xf32> to vector<16x1xf32>
    %cst_27 = arith.constant 1.280000e+02 : f32
    %57 = vector.broadcast %cst_27 : f32 to vector<16x1xf32>
    %58 = arith.divf %56, %57 : vector<16x1xf32>
    %59 = vector.broadcast %51 : vector<16x1xf32> to vector<16x128xf32>
    %60 = arith.subf %45, %59 : vector<16x128xf32>
    %cst_28 = arith.constant 9.99999974E-6 : f32
    %61 = vector.broadcast %cst_28 : f32 to vector<16x1xf32>
    %62 = arith.addf %58, %61 : vector<16x1xf32>
    %63 = math.rsqrt %62 : vector<16x1xf32>
    %64 = vector.broadcast %63 : vector<16x1xf32> to vector<16x128xf32>
    %65 = arith.mulf %60, %64 : vector<16x128xf32>
    %66 = vector.broadcast %46 : vector<1x128xf32> to vector<16x128xf32>
    %67 = arith.mulf %65, %66 : vector<16x128xf32>
    %68 = vector.broadcast %47 : vector<1x128xf32> to vector<16x128xf32>
    %69 = arith.addf %67, %68 : vector<16x128xf32>
    %c0_29 = arith.constant 0 : index
    %c0_30 = arith.constant 0 : index
    %c0_31 = arith.constant 0 : index
    %70 = vector.load %arg15[%c0_29, %c0_30, %c0_31] : memref<1x16x128xf32, #tpu.memory_space<vmem>>, vector<1x16x128xf32>
    %71 = vector.shape_cast %70 : vector<1x16x128xf32> to vector<16x128xf32>
    %72 = vector.shape_cast %69 : vector<16x128xf32> to vector<1x16x128xf32>
    tpu.vector_store %arg15[%c0_29, %c0_30, %c0_31], %72 {strides = array<i32>} : memref<1x16x128xf32, #tpu.memory_space<vmem>>, vector<1x16x128xf32>,
    return
  }
  func.func @transform_0(%arg0: i32, %arg1: i32) -> (i32, i32, i32) {
    %c0_i32 = arith.constant 0 : i32
    %c0_i32_0 = arith.constant 0 : i32
    %c0_i32_1 = arith.constant 0 : i32
    return %arg0, %c0_i32, %c0_i32_0 : i32, i32, i32
  }
  func.func @transform_1(%arg0: i32, %arg1: i32) -> (i32, i32) {
    %c0_i32 = arith.constant 0 : i32
    %c0_i32_0 = arith.constant 0 : i32
    %c0_i32_1 = arith.constant 0 : i32
    return %c0_i32, %c0_i32_0 : i32, i32
  }
  func.func @transform_2(%arg0: i32, %arg1: i32) -> (i32, i32) {
    %c0_i32 = arith.constant 0 : i32
    %c0_i32_0 = arith.constant 0 : i32
    %c0_i32_1 = arith.constant 0 : i32
    return %c0_i32, %c0_i32_0 : i32, i32
  }
  func.func @transform_3(%arg0: i32, %arg1: i32) -> (i32, i32) {
    %c0_i32 = arith.constant 0 : i32
    %c0_i32_0 = arith.constant 0 : i32
    %c0_i32_1 = arith.constant 0 : i32
    return %c0_i32, %c0_i32_0 : i32, i32
  }
  func.func @transform_4(%arg0: i32, %arg1: i32) -> (i32, i32) {
    %c0_i32 = arith.constant 0 : i32
    %c0_i32_0 = arith.constant 0 : i32
    %c0_i32_1 = arith.constant 0 : i32
    return %c0_i32, %c0_i32_0 : i32, i32
  }
  func.func @transform_5(%arg0: i32, %arg1: i32) -> (i32, i32) {
    %c0_i32 = arith.constant 0 : i32
    %c0_i32_0 = arith.constant 0 : i32
    %c0_i32_1 = arith.constant 0 : i32
    return %c0_i32, %c0_i32_0 : i32, i32
  }
  func.func @transform_6(%arg0: i32, %arg1: i32) -> (i32, i32) {
    %c0_i32 = arith.constant 0 : i32
    %c0_i32_0 = arith.constant 0 : i32
    %c0_i32_1 = arith.constant 0 : i32
    return %c0_i32, %c0_i32_0 : i32, i32
  }
  func.func @transform_7(%arg0: i32, %arg1: i32) -> (i32, i32) {
    %c0_i32 = arith.constant 0 : i32
    %c0_i32_0 = arith.constant 0 : i32
    %c0_i32_1 = arith.constant 0 : i32
    return %c0_i32, %c0_i32_0 : i32, i32
  }
  func.func @transform_8(%arg0: i32, %arg1: i32) -> (i32, i32) {
    %c0_i32 = arith.constant 0 : i32
    %c0_i32_0 = arith.constant 0 : i32
    %c0_i32_1 = arith.constant 0 : i32
    return %c0_i32, %c0_i32_0 : i32, i32
  }
  func.func @transform_9(%arg0: i32, %arg1: i32) -> (i32, i32) {
    %c0_i32 = arith.constant 0 : i32
    %c0_i32_0 = arith.constant 0 : i32
    %c0_i32_1 = arith.constant 0 : i32
    return %c0_i32, %c0_i32_0 : i32, i32
  }
  func.func @transform_10(%arg0: i32, %arg1: i32) -> (i32, i32) {
    %c0_i32 = arith.constant 0 : i32
    %c0_i32_0 = arith.constant 0 : i32
    %c0_i32_1 = arith.constant 0 : i32
    return %c0_i32, %c0_i32_0 : i32, i32
  }
  func.func @transform_11(%arg0: i32, %arg1: i32) -> (i32, i32) {
    %c0_i32 = arith.constant 0 : i32
    %c0_i32_0 = arith.constant 0 : i32
    %c0_i32_1 = arith.constant 0 : i32
    return %c0_i32, %c0_i32_0 : i32, i32
  }
  func.func @transform_12(%arg0: i32, %arg1: i32) -> (i32, i32) {
    %c0_i32 = arith.constant 0 : i32
    %c0_i32_0 = arith.constant 0 : i32
    %c0_i32_1 = arith.constant 0 : i32
    return %c0_i32, %c0_i32_0 : i32, i32
  }
  func.func @transform_13(%arg0: i32, %arg1: i32) -> (i32, i32, i32) {
    %c0_i32 = arith.constant 0 : i32
    %c0_i32_0 = arith.constant 0 : i32
    return %arg0, %arg1, %c0_i32 : i32, i32, i32
  }
}

</mosaic_0001>

<bundles_post_ra>
// kernel: tpu_custom_call.1
= control target key start
LH: loop header
LB: loop body
LE: loop exit
PB: predicated region body
PF: predicated region fallthrough
CT: control target
= control target key end

     0   :  { %s5714_s0 = inlined_call_operand.hbm [shape: f32[2,16,128], index: 0, kind: input, shape index: {}]   ;;  %s5715_s1 = inlined_call_operand.hbm [shape: bf16[128,128], index: 1, kind: input, shape index: {}]   ;;  %s5716_s2 = inlined_call_operand.vmem [shape: f32[1,128], index: 2, kind: input, shape index: {}]   ;;  %s5717_s3 = inlined_call_operand.hbm [shape: bf16[128,128], index: 3, kind: input, shape index: {}]   ;;  %s5718_s4 = inlined_call_operand.vmem [shape: f32[1,128], index: 4, kind: input, shape index: {}]   ;;  %s5719_s5 = inlined_call_operand.hbm [shape: bf16[128,128], index: 5, kind: input, shape index: {}]   ;;  %s5720_s6 = inlined_call_operand.vmem [shape: f32[1,128], index: 6, kind: input, shape index: {}]   ;;  %s5721_s7 = inlined_call_operand.hbm [shape: bf16[128,128], index: 7, kind: input, shape index: {}]   ;;  %s5722_s8 = inlined_call_operand.vmem [shape: f32[1,128], index: 8, kind: input, shape index: {}]   ;;  %s5723_s9 = inlined_call_operand.vmem [shape: f32[1,128], index: 9, kind: input, shape index: {}]   ;;  %s5724_s10 = inlined_call_operand.vmem [shape: f32[1,128], index: 10, kind: input, shape index: {}]   ;;  %s5725_s11 = inlined_call_operand.vmem [shape: f32[1,128], index: 11, kind: input, shape index: {}]   ;;  %s5726_s12 = inlined_call_operand.vmem [shape: f32[1,128], index: 12, kind: input, shape index: {}]   ;;  %s5727_s13 = inlined_call_operand.hbm [shape: f32[2,16,128], index: 13, kind: output, shape index: {}]  }
   0x1   :  { %5735 = sst [smem:[#allocation22_spill]] %s5716_s2 }
   0x2   :  { %5736 = sst [smem:[#allocation23_spill]] %s5718_s4 }
   0x3   :  { %5737 = sst [smem:[#allocation24_spill]] %s5720_s6 }
   0x4   :  { %5738 = sst [smem:[#allocation25_spill]] %s5722_s8 }
   0x5   :  { %5739 = sst [smem:[#allocation26_spill]] %s5725_s11 }
   0x6   :  { %5740 = sst [smem:[#allocation27_spill]] %s5726_s12 }
   0x7   :  { %5741 = sst [smem:[#allocation28_spill]] %s5727_s13 }
   0x8   :  { %18 = vsyncpa [#allocation6], 0 }
   0x9   :  { %20 = vsyncpa [#allocation6 + $0x1], 0 }
   0xa   :  { %21 = vsyncpa [#allocation9], 0 }
   0xb   :  { %22 = vsyncpa [#allocation12], 0 }
   0xc   :  { %23 = vsyncpa [#allocation7], 0 }
   0xd   :  { %25 = vsyncpa [#allocation7 + $0x1], 0  ;;  %s4743_s25 = smov 0   ;;  %s4745_s26 = smov 0  }
   0xe   :  { %s4747_s27 = smov 0   ;;  %s4749_s28 = smov 0  }
   0xf   :  { %s4751_s29 = smov 0   ;;  %s4753_s30 = smov 0  }
  0x10 LB: > { %5742 = sst [smem:[#allocation19_spill]] %s4628_s25  ;;  %s3804_s14 = sadd.s32 4294967295, %s4648_s30   ;;  %s4648_s30 = sphi %s4753_s30, %s31_s30   ;;  %s4644_s29 = sphi %s4751_s29, %s5775_s29   ;;  %s4640_s28 = sphi %s4749_s28, %s5774_s28   ;;  %s4636_s27 = sphi %s4747_s27, %s5773_s27   ;;  %s4632_s26 = sphi %s4745_s26, %s5772_s26   ;;  %s4628_s25 = sphi %s4743_s25, %s5771_s25  }
  0x11   : > { %5743 = sst [smem:[#allocation20_spill]] %s4640_s28  ;;  %s3805_s15 = sadd.s32 4294967294, %s4648_s30  }
  0x12   : > { %p63_p0 = scmp.ne.s32.totalorder %s4632_s26, %s4628_s25  ;;  %p4777_p1 = scmp.eq.s32.totalorder %s3804_s14, 0 }
  0x13   : > { %p4781_p2 = scmp.eq.s32.totalorder %s3804_s14, 1  ;;  %p347_p3 = scmp.eq.s32.totalorder %s3805_s15, 1 }
  0x14   : > { %s5744_s16 = scalar_select %p4777_p1, 1, 0 }
  0x15   : > { %s5745_s17 = scalar_select %p4781_p2, 1, 0 }
  0x16   : > { %p4787_p4 = por %p4777_p1, %p63_p0  ;;  %p3806_p5 = scmp.ge.s32.totalorder %s4648_s30, 1 }
  0x17   : > { %p4792_p6 = por %p347_p3, %p63_p0  ;;  %p354_p7 = scmp.lt.s32.totalorder %s4648_s30, 3 }
  0x18   : > { %s5746_s18 = scalar_select %p4787_p4, 1, 0 }
  0x19   : > { %s5747_s19 = scalar_select %p4792_p6, 1, 0 }
  0x1a   : > { %p4797_p8 = pnand %p3806_p5, %p354_p7  ;;  %s4650_s21 = smov [#allocation8]  }
  0x1b   : > { %5748 = sst [smem:[#allocation21_spill]] %s5747_s19  ;;  %s366_s22 = sshll.u32 %s4650_s21, 4  ;;  %s4801_s22 = int_to_ptr.vmem [resolvable:$true] %s366_s22 }
  0x1c   : > { %s5749_s20 = scalar_select %p4797_p8, 1, 0 }
  0x1d   : > { %p4177_p9 = pneg %p4797_p8  ;;  %s4651_s24 = smov [#allocation11]  }
  0x1e   : > { %s398_s14 = sshll.u32 %s4651_s24, 4  ;;  %s4652_s15 = smov [#allocation10]   ;;  %s4812_s14 = int_to_ptr.vmem [resolvable:$true] %s398_s14 }
  0x1f   : > { %p4808_p11 = pnand %p4177_p9, %p4777_p1  ;;  %s4814_s19 = sshll.u32 %s4652_s15, 4  ;;  %s383_s19 = int_to_ptr.vmem [resolvable:$true] %s4814_s19 }
  0x20   : > { %s4416_s13 = scalar_lea.hbm %s5715_s1, 1024 }
  0x21   : > { %p4417_p12 = scmp.ne.s32.totalorder %s5715_s1, %s4416_s13  ;;  %p4824_p13 = pneg %p4808_p11 }
  0x22   : > { %p4423_p5 = scmp.lt.u32.totalorder %s4416_s13, %s5715_s1 }
  0x23   : > { %p4419_p0 = pnand %p4824_p13, %p4417_p12 }
  0x25   : > { %p4420_p3 = pneg %p4419_p0 }
  0x27   : > { %p4425_p7 = pnand %p4423_p5, %p4420_p3 }
  0x29   : > { %4428 = shalt.err (!%p4425_p7)
}
  0x2a   : > { %s4429_s11 = scalar_lea.vmem %s4801_s22, 1024  ;;  %p4437_p1 = scmp.lt.s32.totalorder %s4801_s22, %s4801_s22 }
  0x2b   : > { %p4430_p9 = scmp.ne.s32.totalorder %s4801_s22, %s4429_s11  ;;  %p4438_p4 = scmp.lt.s32.totalorder %s4429_s11, %s4429_s11 }
  0x2d   : > { %p4432_p10 = pnand %p4430_p9, %p4824_p13  ;;  %p4439_p12 = por %p4438_p4, %p4437_p1 }
  0x2f   : > { %p4433_p6 = pneg %p4432_p10 }
  0x31   : > { %p4440_p0 = pnand %p4439_p12, %p4433_p6 }
  0x33   : > { %4443 = shalt.err (!%p4440_p0)
}
  0x34   : > { %s4653_s12 = smov 64   ;;  %s4654_s13 = smov 4  }
  0x35   : > { %4180 = dma.hbm_to_vmem [thread:$0]  (!%p4808_p11), %s5715_s1, 1024, %s4801_s22, [#allocation9], %s4653_s12, %s4653_s12, %s4654_s13  }
  0x36   : > { %s4444_s11 = scalar_lea.hbm %s5719_s5, 1024 }
  0x37   : > { %p4445_p1 = scmp.ne.s32.totalorder %s5719_s5, %s4444_s11  ;;  %p4451_p10 = scmp.lt.u32.totalorder %s4444_s11, %s5719_s5 }
  0x39   : > { %p4447_p4 = pnand %p4445_p1, %p4824_p13 }
  0x3b   : > { %p4448_p6 = pneg %p4447_p4 }
  0x3d   : > { %p4453_p3 = pnand %p4451_p10, %p4448_p6 }
  0x3f   : > { %4456 = shalt.err (!%p4453_p3)
}
  0x40   : > { %s4457_s22 = scalar_lea.vmem %s4812_s14, 1024  ;;  %p4465_p12 = scmp.lt.s32.totalorder %s4812_s14, %s4812_s14 }
  0x41   : > { %p4458_p5 = scmp.ne.s32.totalorder %s4812_s14, %s4457_s22  ;;  %p4466_p0 = scmp.lt.s32.totalorder %s4457_s22, %s4457_s22 }
  0x43   : > { %p4460_p7 = pnand %p4458_p5, %p4824_p13  ;;  %p4467_p1 = por %p4466_p0, %p4465_p12 }
  0x45   : > { %p4461_p9 = pneg %p4460_p7 }
  0x47   : > { %p4468_p4 = pnand %p4467_p1, %p4461_p9 }
  0x49   : > { %4471 = shalt.err (!%p4468_p4)
}
  0x4a   : > { %4186 = dma.hbm_to_vmem [thread:$0]  (!%p4808_p11), %s5719_s5, 1024, %s4812_s14, [#allocation12], %s4653_s12, %s4653_s12, %s4654_s13  }
  0x4b   : > { %s4472_s25 = scalar_lea.hbm %s5717_s3, 1024 }
  0x4c   : > { %p4473_p6 = scmp.ne.s32.totalorder %s5717_s3, %s4472_s25  ;;  %p4479_p5 = scmp.lt.u32.totalorder %s4472_s25, %s5717_s3 }
  0x4e   : > { %p4475_p10 = pnand %p4473_p6, %p4824_p13 }
  0x50   : > { %p4476_p3 = pneg %p4475_p10 }
  0x52   : > { %p4481_p7 = pnand %p4479_p5, %p4476_p3 }
  0x54   : > { %4484 = shalt.err (!%p4481_p7)
}
  0x55   : > { %s4485_s22 = scalar_lea.vmem %s383_s19, 1024  ;;  %p4493_p1 = scmp.lt.s32.totalorder %s383_s19, %s383_s19 }
  0x56   : > { %p4486_p9 = scmp.ne.s32.totalorder %s383_s19, %s4485_s22  ;;  %p4494_p4 = scmp.lt.s32.totalorder %s4485_s22, %s4485_s22 }
  0x58   : > { %p4488_p12 = pnand %p4486_p9, %p4824_p13  ;;  %p4495_p8 = por %p4494_p4, %p4493_p1 }
  0x5a   : > { %p4489_p0 = pneg %p4488_p12 }
  0x5c   : > { %p4496_p2 = pnand %p4495_p8, %p4489_p0 }
  0x5e   : > { %4499 = shalt.err (!%p4496_p2)
}
  0x5f   : > { %4183 = dma.hbm_to_vmem [thread:$0]  (!%p4808_p11), %s5717_s3, 1024, %s383_s19, [#allocation9], %s4653_s12, %s4653_s12, %s4654_s13  }
  0x60   : > { %s4655_s4 = smov [#allocation13]   ;;  %s4500_s21 = scalar_lea.hbm %s5721_s7, 1024 }
  0x61   : > { %s414_s6 = sshll.u32 %s4655_s4, 4  ;;  %p4501_p2 = scmp.ne.s32.totalorder %s5721_s7, %s4500_s21  ;;  %s415_s6 = int_to_ptr.vmem [resolvable:$true] %s414_s6 }
  0x62   : > { %p4507_p10 = scmp.lt.u32.totalorder %s4500_s21, %s5721_s7 }
  0x63   : > { %p4503_p8 = pnand %p4501_p2, %p4824_p13 }
  0x65   : > { %p4504_p6 = pneg %p4503_p8 }
  0x67   : > { %p4509_p3 = pnand %p4507_p10, %p4504_p6 }
  0x69   : > { %4512 = shalt.err (!%p4509_p3)
}
  0x6a   : > { %s4513_s19 = scalar_lea.vmem %s415_s6, 1024  ;;  %p4521_p12 = scmp.lt.s32.totalorder %s415_s6, %s415_s6 }
  0x6b   : > { %p4514_p5 = scmp.ne.s32.totalorder %s415_s6, %s4513_s19  ;;  %p4522_p0 = scmp.lt.s32.totalorder %s4513_s19, %s4513_s19 }
  0x6d   : > { %p4516_p7 = pnand %p4514_p5, %p4824_p13  ;;  %p4523_p1 = por %p4522_p0, %p4521_p12 }
  0x6f   : > { %p4517_p9 = pneg %p4516_p7 }
  0x71   : > { %p4524_p4 = pnand %p4523_p1, %p4517_p9 }
  0x73   : > { %4527 = shalt.err (!%p4524_p4)
}
  0x74   : > { %4189 = dma.hbm_to_vmem [thread:$0]  (!%p4808_p11), %s5721_s7, 1024, %s415_s6, [#allocation12], %s4653_s12, %s4653_s12, %s4654_s13  }
  0x75   : > { %s43_s28 = sadd.s32 1, %s4644_s29  ;;  %s50_s23 = sadd.s32 1, %s4636_s27 }
  0x76   : > { %p45_p13 = scmp.ge.s32.totalorder %s43_s28, 2  ;;  %p57_p2 = scmp.ne.s32.totalorder %s4636_s27, %s4632_s26 }
  0x77   : > { %p58_p8 = scmp.eq.s32.totalorder %s4648_s30, 0  ;;  %p4202_p6 = scmp.lt.s32.totalorder %s4648_s30, 2 }
  0x78   : > { %s5777_s28 = smov (%p45_p13, %s43_s28), 0  ;;  %p5752_p3 = scmp.ne.s32.totalorder %s5745_s17, 0 }
  0x79   : > { %p59_p10 = por %p58_p8, %p57_p2  ;;  %s47_s8 = ssub.s32 %s4644_s29, %s5777_s28 }
  0x7a   : > { %p4927_p5 = por %p5752_p3, %p57_p2  ;;  %s443_s25 = sand.u32 1, %s4636_s27  }
  0x7b   : > { %p48_p7 = scmp.eq.s32.totalorder %s47_s8, 0  ;;  %s3812_s12 = sshll.u32 %s443_s25, 4 }
  0x7c   : > { %s3911_s13 = sshll.u32 %s4644_s29, 8  ;;  %s447_s17 = scalar_lea.vmem [#allocation5], %s3812_s12 }
  0x7d   : > { %s4936_s6 = scalar_select %p48_p7, %s4636_s27, %s50_s23  }
  0x7e   : > { %s4941_s15 = scalar_lea.hbm %s5714_s0, %s3911_s13  ;;  %s454_s11 = sshll.u32 %s447_s17, 4  ;;  %s4949_s11 = int_to_ptr.vmem [resolvable:$true] %s454_s11 }
  0x7f   : > { %p4945_p11 = pnand %p4202_p6, %p59_p10  ;;  %s4951_s19 = scalar_lea.sflag [#allocation6], %s443_s25 }
  0x80   : > { %s4528_s14 = scalar_lea.hbm %s4941_s15, 256  ;;  %s4533_s8 = scalar_lea.hbm %s5714_s0, 512 }
  0x81   : > { %p4529_p9 = scmp.ne.s32.totalorder %s4941_s15, %s4528_s14  ;;  %p4530_p12 = pneg %p4945_p11 }
  0x82   : > { %p4534_p4 = scmp.lt.u32.totalorder %s4941_s15, %s5714_s0  ;;  %p4535_p13 = scmp.lt.u32.totalorder %s4533_s8, %s4528_s14 }
  0x83   : > { %p4531_p0 = pnand %p4530_p12, %p4529_p9  ;;  %p4537_p8 = scmp.lt.u32.totalorder %s4528_s14, %s4941_s15 }
  0x84   : > { %p4536_p2 = por %p4535_p13, %p4534_p4 }
  0x85   : > { %p4532_p1 = pneg %p4531_p0 }
  0x86   : > { %p4538_p6 = por %p4537_p8, %p4536_p2 }
  0x88   : > { %p4539_p10 = pnand %p4538_p6, %p4532_p1 }
  0x8a   : > { %4542 = shalt.err (!%p4539_p10)
}
  0x8b   : > { %s4543_s25 = scalar_lea.vmem %s4949_s11, 256  ;;  %s4656_s21 = smov [#allocation5]  }
  0x8c   : > { %p4544_p3 = scmp.ne.s32.totalorder %s4949_s11, %s4543_s25  ;;  %s4548_s24 = sshll.u32 %s4656_s21, 4  ;;  %s4549_s24 = int_to_ptr.vmem [resolvable:$false] %s4548_s24 }
  0x8d   : > { %s4550_s17 = scalar_lea.vmem %s4549_s24, 512  ;;  %p4551_p0 = scmp.lt.s32.totalorder %s4949_s11, %s4549_s24 }
  0x8e   : > { %p4546_p7 = pnand %p4544_p3, %p4530_p12  ;;  %p4552_p4 = scmp.lt.s32.totalorder %s4550_s17, %s4543_s25 }
  0x90   : > { %p4547_p9 = pneg %p4546_p7  ;;  %p4553_p13 = por %p4552_p4, %p4551_p0 }
  0x92   : > { %p4554_p2 = pnand %p4553_p13, %p4547_p9 }
  0x94   : > { %4557 = shalt.err (!%p4554_p2)
}
  0x95   : > { %s4657_s14 = smov 128   ;;  %s4658_s2 = smov 8  }
  0x96   : > { %4193 = dma.hbm_to_vmem [thread:$0]  (!%p4945_p11), %s4941_s15, 256, %s4949_s11, %s4951_s19, %s4657_s14, %s4657_s14, %s4658_s2  }
  0x97   : > { %p5755_p12 = scmp.ne.s32.totalorder %s5749_s20, 0 }
  0x98   : > { %s4982_s23 = sand.u32 (!%p5755_p12), 1, %s4632_s26   ;;  %p5756_p1 = scmp.ne.s32.totalorder (!%p5755_p12), %s5746_s18, 0 }
  0x99   : > { %466 = sbr.rel (%p5755_p12) target bundleno = 2381 (0x94d), region = 72  ;;  %s3816_s8 = sshll.u32 (!%p5755_p12), %s4982_s23, 4 }
  0x9a   : > { %s469_s12 = scalar_lea.sflag (!%p5755_p12), [#allocation6], %s4982_s23  ;;  %s4988_s13 = scalar_lea.vmem (!%p5755_p12), [#allocation5], %s3816_s8 }
  0xa0   : > { %4611 = dma.done.wait (%p5756_p1), %s469_s12, 256  }
  0xa1   : > { %4613 = vsyncadd (%p5756_p1), %s469_s12, 4294967040  ;;  %p5757_p11 = scmp.ne.s32.totalorder %s5744_s16, 0 }
  0xa3   : > { %4615 = dma.done.wait (%p5757_p11), [#allocation9], 2048  }
  0xa4   : > { %4617 = vsyncadd (%p5757_p11), [#allocation9], 4294965248 }
  0xa5   : > { %4619 = dma.done.wait (%p5757_p11), [#allocation12], 2048  }
  0xa6   : > { %4621 = vsyncadd (%p5757_p11), [#allocation12], 4294965248  ;;  %v537_v0 = vld [vmem:[%s4988_s13] sm:$0xff]  ;;  %v538_v1 = vld [vmem:[%s4988_s13 + $0x8] sm:$0xff]  ;;  %v4659_v4 = vmov 0.0   ;;  %vm4660_vm0 = vmmov 0  }
  0xa7   : > { %541 = vadd.xlane.f32.xlu0 %v537_v0  ;;  %v4312_v2 = vld [vmem:[#allocation10] sm:$0xff]   ;;  %3981 = vmatprep.subr.bf16.mxu0 %v4659_v4  ;;  %v4314_v5 = vld [vmem:[#allocation10 + $0x8] sm:$0xff]   ;;  %v4316_v15 = vld [vmem:[#allocation10 + $0x10] sm:$0xff]   ;;  %s5758_s19 = sld [smem:[#allocation23_spill]]  ;;  %s5759_s24 = sld [smem:[#allocation24_spill]]  ;;  %vm1968_vm1 = vcmask 130048  }
  0xa8   : > { %v4313_v3 = vld [vmem:[#allocation11] sm:$0xff]   ;;  %4001 = vmatprep.subr.bf16.mxu1 %v4659_v4  ;;  %3982 = vmatpush3.bf16.msra.mxu0 %v4312_v2  ;;  %v4315_v14 = vld [vmem:[#allocation11 + $0x8] sm:$0xff]   ;;  %v4317_v16 = vld [vmem:[#allocation11 + $0x10] sm:$0xff]   ;;  %s4661_s17 = smov 96   ;;  %s4662_s14 = smov 112   ;;  %vm3483_vm2 = vcmask 261120  }
  0xa9   : > { %4002 = vmatpush3.bf16.msra.mxu1 %v4313_v3  ;;  %3983 = vmatprep.subr.bf16.mxu0 %v4659_v4  ;;  %v4318_v17 = vld [vmem:[#allocation10 + $0x18] sm:$0xff]   ;;  %v4320_v19 = vld [vmem:[#allocation10 + $0x20] sm:$0xff]   ;;  %v4322_v21 = vld [vmem:[#allocation10 + $0x28] sm:$0xff]   ;;  %s4663_s2 = smov 80   ;;  %s4664_s12 = smov 48   ;;  %vm3486_vm3 = vcmask 392192  }
  0xaa   : > { %4003 = vmatprep.subr.bf16.mxu1 %v4659_v4  ;;  %v4319_v18 = vld [vmem:[#allocation11 + $0x18] sm:$0xff]   ;;  %v4321_v20 = vld [vmem:[#allocation11 + $0x20] sm:$0xff]   ;;  %3997 = vmatprep.mubr.msk.bf16.mxu0 %vm4660_vm0, %v4659_v4  ;;  %v4323_v22 = vld [vmem:[#allocation11 + $0x28] sm:$0xff]   ;;  %s4665_s16 = smov 64   ;;  %s4666_s18 = smov 16   ;;  %vm3489_vm4 = vcmask 523264  }
  0xab   : > { %543 = vadd.xlane.f32.xlu0 %v538_v1  ;;  %4017 = vmatprep.mubr.msk.bf16.mxu1 %vm4660_vm0, %v4659_v4  ;;  %v4324_v23 = vld [vmem:[#allocation10 + $0x30] sm:$0xff]   ;;  %v4326_v25 = vld [vmem:[#allocation10 + $0x38] sm:$0xff]   ;;  %v3822_v35 = vld [vmem:[%s5723_s9] ss:$0 sm:$0xff]  ;;  %s4667_s20 = smov 32   ;;  %s5760_s22 = sld [smem:[#allocation22_spill]] }
  0xac   : > { %3984 = vmatpush3.bf16.msra.mxu0 %v4314_v5  ;;  %v4325_v24 = vld [vmem:[#allocation11 + $0x30] sm:$0xff]   ;;  %v4327_v26 = vld [vmem:[#allocation11 + $0x38] sm:$0xff]   ;;  %v3823_v39 = vld [vmem:[%s5724_s10] ss:$0 sm:$0xff]  ;;  %vm3492_vm5 = vcmask 654336   ;;  %vm3495_vm6 = vcmask 785408  }
  0xad   : > { %3985 = vmatprep.subr.bf16.mxu0 %v4659_v4  ;;  %4004 = vmatpush3.bf16.msra.mxu1 %v4315_v14  ;;  %v4328_v43 = vld [vmem:[#allocation8] sm:$0xff]   ;;  %v4329_v45 = vld [vmem:[#allocation8 + $0x8] sm:$0xff]   ;;  %v4330_v46 = vld [vmem:[#allocation8 + $0x10] sm:$0xff]   ;;  %vm3498_vm7 = vcmask 916480   ;;  %s5761_s21 = sld [smem:[#allocation25_spill]] }
  0xae   : > { %4005 = vmatprep.subr.bf16.mxu1 %v4659_v4  ;;  %v4331_v47 = vld [vmem:[#allocation8 + $0x18] sm:$0xff]   ;;  %v4332_v48 = vld [vmem:[#allocation8 + $0x20] sm:$0xff]   ;;  %v4333_v49 = vld [vmem:[#allocation8 + $0x28] sm:$0xff]  }
  0xaf   : > { %v4334_v50 = vld [vmem:[#allocation8 + $0x30] sm:$0xff]   ;;  %v4335_v51 = vld [vmem:[#allocation8 + $0x38] sm:$0xff]   ;;  %v3824_v52 = vld [vmem:[%s5758_s19] ss:$0 sm:$0xff]  ;;  %s5765_s19 = sld [smem:[#allocation28_spill]] }
  0xb0   : > { %3986 = vmatpush3.bf16.msra.mxu0 %v4316_v15  ;;  %v3833_v54 = vld [vmem:[%s5759_s24] ss:$0 sm:$0xff]  ;;  %s5762_s24 = sld [smem:[#allocation20_spill]] }
  0xb1   : > { %4006 = vmatpush3.bf16.msra.mxu1 %v4317_v16  ;;  %3987 = vmatprep.subr.bf16.mxu0 %v4659_v4  ;;  %v3842_v5 = vld [vmem:[%s5760_s22] ss:$0 sm:$0xff]  ;;  %v4668_v16 = vmov 1983009808  }
  0xb2   : > { %4007 = vmatprep.subr.bf16.mxu1 %v4659_v4 }
  0xb4   : > { %3988 = vmatpush3.bf16.msra.mxu0 %v4318_v17  ;;  %v979_v17 = vunpack.c.l.s4 %v4668_v16 }
  0xb5   : > { %4008 = vmatpush3.bf16.msra.mxu1 %v4319_v18  ;;  %3989 = vmatprep.subr.bf16.mxu0 %v4659_v4  ;;  %v981_v18 = vlaneseq }
  0xb6   : > { %4009 = vmatprep.subr.bf16.mxu1 %v4659_v4 }
  0xb8   : > { %3990 = vmatpush3.bf16.msra.mxu0 %v4320_v19 }
  0xb9   : > { %4010 = vmatpush3.bf16.msra.mxu1 %v4321_v20  ;;  %3991 = vmatprep.subr.bf16.mxu0 %v4659_v4  ;;  %v4669_v20 = vmov 1934713408  }
  0xba   : > { %4011 = vmatprep.subr.bf16.mxu1 %v4659_v4 }
  0xbc   : > { %3992 = vmatpush3.bf16.msra.mxu0 %v4322_v21  ;;  %v1011_v21 = vunpack.c.l.s4 %v4669_v20 }
  0xbd   : > { %4012 = vmatpush3.bf16.msra.mxu1 %v4323_v22  ;;  %3993 = vmatprep.subr.bf16.mxu0 %v4659_v4  ;;  %v980_v22 = vunpack.c.0.s8 %v979_v17 }
  0xbe   : > { %4013 = vmatprep.subr.bf16.mxu1 %v4659_v4 }
  0xc0   : > { %3994 = vmatpush3.bf16.msra.mxu0 %v4324_v23  ;;  %v982_v23 = vshrl.u32 %v981_v18, 7 }
  0xc1   : > { %4014 = vmatpush3.bf16.msra.mxu1 %v4325_v24  ;;  %3995 = vmatprep.subr.bf16.mxu0 %v4659_v4 }
  0xc2   : > { %4015 = vmatprep.subr.bf16.mxu1 %v4659_v4 }
  0xc4   : > { %3996 = vmatpush3.bf16.msra.mxu0 %v4326_v25 }
  0xc5   : > { %4016 = vmatpush3.bf16.msra.mxu1 %v4327_v26  ;;  %4021 = vmatprep.subr.bf16.mxu0 %v4659_v4 }
  0xc6   : > { %4041 = vmatprep.subr.bf16.mxu1 %v4659_v4 }
 0x134   : > { %v542_v6 = vpop.xlane.xlu0 %541 }
 0x135   : > { %v546_v7 = vmul.f32 0.0078125, %v542_v6 }
 0x137   : > { %v548_v8 = vsub.f32 %v537_v0, %v546_v7 }
 0x138   : > { %v544_v9 = vpop.xlane.xlu0 %543 }
 0x139   : > { %v547_v10 = vmul.f32 0.0078125, %v544_v9  ;;  %v550_v11 = vmul.f32 %v548_v8, %v548_v8 }
 0x13b   : > { %v549_v12 = vsub.f32 %v538_v1, %v547_v10  ;;  %552 = vadd.xlane.f32.xlu1 %v550_v11 }
 0x13d   : > { %v551_v13 = vmul.f32 %v549_v12, %v549_v12 }
 0x13f   : > { %554 = vadd.xlane.f32.xlu1 %v551_v13 }
 0x1c8   : > { %v553_v27 = vpop.xlane.xlu1 %552 }
 0x1c9   : > { %v556_v28 = vmul.f32 0.0078125, %v553_v27 }
 0x1cb   : > { %v558_v29 = vadd.f32 1e-05, %v556_v28 }
 0x1cc   : > { %v555_v30 = vpop.xlane.xlu1 %554 }
 0x1cd   : > { %4344 = vrsqrt.f32 %v558_v29  ;;  %v557_v31 = vmul.f32 0.0078125, %v555_v30 }
 0x1cf   : > { %v559_v32 = vadd.f32 1e-05, %v557_v31  ;;  %v1012_v31 = vunpack.c.0.s8 %v1011_v21 }
 0x1d1   : > { %4346 = vrsqrt.f32 %v559_v32 }
 0x1d7   : > { %v4345_v33 = vpop.eup %4344 }
 0x1d8   : > { %v562_v34 = vmul.f32 %v4345_v33, %v548_v8 }
 0x1da   : > { %v570_v38 = vmul.f32 %v3822_v35, %v562_v34  ;;  %v5093_v34 = vsub.s32 %v980_v22, %v982_v23 }
 0x1db   : > { %v4347_v36 = vpop.eup %4346 }
 0x1dc   : > { %v563_v37 = vmul.f32 %v4347_v36, %v549_v12  ;;  %v578_v41 = vadd.f32 %v3823_v39, %v570_v38 }
 0x1de   : > { %v571_v40 = vmul.f32 %v3822_v35, %v563_v37 }
 0x1e0   : > { %v579_v42 = vadd.f32 %v3823_v39, %v571_v40 }
 0x1e2   : > { %v580_v44 = vpack.c.bf16 %v579_v42, %v578_v41 }
 0x1e4   : > { %3998 = vmatmul.mubr.bf16.vlgmr.msra.gmra.mrb[0].mxu0 %v580_v44  ;;  %4018 = vmatmul.mubr.bf16.vlgmr.msra.gmra.mrb[0].mxu1 %v580_v44 }
 0x1e5   : > { %4022 = vmatpush3.bf16.msra.mxu0 %v4328_v43  ;;  %4037 = vmatprep.mubr.msk.bf16.mxu0 %vm4660_vm0, %v4659_v4 }
 0x1e6   : > { %4023 = vmatprep.subr.bf16.mxu0 %v4659_v4  ;;  %4043 = vmatprep.mubr.msk.bf16.mxu1 %vm4660_vm0, %v4659_v4 }
 0x1e9   : > { %4024 = vmatpush3.bf16.msra.mxu0 %v4329_v45  ;;  %v5095_v45 = vsub.s32 %v1012_v31, %v982_v23 }
 0x1ea   : > { %4025 = vmatprep.subr.bf16.mxu0 %v4659_v4 }
 0x1ed   : > { %4026 = vmatpush3.bf16.msra.mxu0 %v4330_v46 }
 0x1ee   : > { %4027 = vmatprep.subr.bf16.mxu0 %v4659_v4 }
 0x1f1   : > { %4028 = vmatpush3.bf16.msra.mxu0 %v4331_v47 }
 0x1f2   : > { %4029 = vmatprep.subr.bf16.mxu0 %v4659_v4 }
 0x1f5   : > { %4030 = vmatpush3.bf16.msra.mxu0 %v4332_v48 }
 0x1f6   : > { %4031 = vmatprep.subr.bf16.mxu0 %v4659_v4 }
 0x1f9   : > { %4032 = vmatpush3.bf16.msra.mxu0 %v4333_v49 }
 0x1fa   : > { %4033 = vmatprep.subr.bf16.mxu0 %v4659_v4 }
 0x1fd   : > { %4034 = vmatpush3.bf16.msra.mxu0 %v4334_v50 }
 0x1fe   : > { %4035 = vmatprep.subr.bf16.mxu0 %v4659_v4 }
 0x201   : > { %4036 = vmatpush3.bf16.msra.mxu0 %v4335_v51 }
 0x202   : > { %4089 = vmatprep.subr.bf16.mxu0 %v4659_v4 }
 0x204   : > { %4038 = vmatmul.mubr.bf16.vlgmr.msra.gmra.mrb[4].mxu0 %v580_v44 }
 0x205   : > { %4091 = vmatprep.mubr.msk.bf16.mxu0 %vm4660_vm0, %v4659_v4 }
 0x2b7   : > { %v687_v53 = vpop.f32.mrb[0].mxu0  ;;  %v801_v55 = vpop.f32.mrb[0].mxu1 }
 0x2b8   : > { %v3999_v56 = vpop.f32.mrb[1].mxu0  ;;  %v4019_v57 = vpop.f32.mrb[1].mxu1  ;;  %v688_v60 = vadd.f32 %v3824_v52, %v687_v53  ;;  %v802_v61 = vadd.f32 %v3833_v54, %v801_v55 }
 0x2b9   : > { %v690_v58 = vpop.f32.mrb[2].mxu0  ;;  %v804_v59 = vpop.f32.mrb[2].mxu1 }
 0x2ba   : > { %v691_v62 = vadd.f32 %v3824_v52, %v690_v58  ;;  %v805_v63 = vadd.f32 %v3833_v54, %v804_v59  ;;  %v4000_v0 = vpop.f32.mrb[3].mxu0  ;;  %v4020_v1 = vpop.f32.mrb[3].mxu1 }
 0x2bc   : > { %v5052_v2 = vpack.c.bf16 %v691_v62, %v688_v60  ;;  %v5054_v3 = vpack.c.bf16 %v805_v63, %v802_v61 }
 0x2be   : > { %1276 = vrot.lane.b32.xlu1 %v5052_v2, %s4661_s17  ;;  %1274 = vrot.lane.b32.xlu0 %v5052_v2, %s4662_s14  ;;  %v1292_v32 = vshrl.u32 %v5052_v2, 16 }
 0x2c2   : > { %1278 = vrot.lane.b32.xlu1 %v5052_v2, %s4663_s2  ;;  %1282 = vrot.lane.b32.xlu0 %v5052_v2, %s4664_s12 }
 0x2c6   : > { %1280 = vrot.lane.b32.xlu1 %v5052_v2, %s4665_s16  ;;  %1286 = vrot.lane.b32.xlu0 %v5052_v2, %s4666_s18 }
 0x2ca   : > { %1284 = vrot.lane.b32.xlu1 %v5052_v2, %s4667_s20 }
 0x2d7   : > { %v921_v6 = vpop.f32.mrb[4].mxu0 }
 0x2d8   : > { %v4039_v7 = vpop.f32.mrb[5].mxu0  ;;  %v922_v9 = vadd.f32 %v3842_v5, %v921_v6 }
 0x2d9   : > { %v924_v8 = vpop.f32.mrb[6].mxu0 }
 0x2da   : > { %v925_v10 = vadd.f32 %v3842_v5, %v924_v8  ;;  %v4040_v11 = vpop.f32.mrb[7].mxu0 }
 0x2dc   : > { %v5073_v12 = vpack.c.bf16 %v925_v10, %v922_v9 }
 0x2de   : > { %932 = vrot.lane.b32.xlu0 %v5073_v12, %s4661_s17  ;;  %930 = vrot.lane.b32.xlu1 %v5073_v12, %s4662_s14 }
 0x2e2   : > { %936 = vrot.lane.b32.xlu0 %v5073_v12, %s4665_s16  ;;  %934 = vrot.lane.b32.xlu1 %v5073_v12, %s4663_s2 }
 0x2e6   : > { %940 = vrot.lane.b32.xlu0 %v5073_v12, %s4667_s20  ;;  %938 = vrot.lane.b32.xlu1 %v5073_v12, %s4664_s12 }
 0x2ea   : > { %1618 = vrot.lane.b32.xlu0 %v5054_v3, %s4662_s14  ;;  %942 = vrot.lane.b32.xlu1 %v5073_v12, %s4666_s18 }
 0x330   : > { %v1277_v13 = vpop.permute.xlu1 %1276  ;;  %v1275_v14 = vpop.permute.xlu0 %1274 }
 0x331   : > { %v1290_v27 = vpack.i.b16 %v1275_v14, %v5052_v2  ;;  %v1293_v28 = vshrl.u32 %v1275_v14, 16  ;;  %v1300_v36 = vshrl.u32 %v1277_v13, 16 }
 0x333   : > { %v1294_v44 = vpack.i.b16 %v1293_v28, %v1292_v32 }
 0x334   : > { %v1279_v15 = vpop.permute.xlu1 %1278  ;;  %v1283_v19 = vpop.permute.xlu0 %1282 }
 0x335   : > { %v1309_v29 = vshrl.u32 %v1283_v19, 16  ;;  %v1301_v33 = vshrl.u32 %v1279_v15, 16  ;;  %v1298_v40 = vpack.i.b16 %v1279_v15, %v1277_v13 }
 0x337   : > { %v1302_v46 = vpack.i.b16 %v1301_v33, %v1300_v36 }
 0x338   : > { %v1281_v24 = vpop.permute.xlu1 %1280  ;;  %v1287_v30 = vpop.permute.xlu0 %1286 }
 0x339   : > { %v1306_v25 = vpack.i.b16 %v1283_v19, %v1281_v24  ;;  %v1308_v26 = vshrl.u32 %v1281_v24, 16  ;;  %v1317_v41 = vshrl.u32 %v1287_v30, 16 }
 0x33b   : > { %v1310_v37 = vpack.i.b16 %v1309_v29, %v1308_v26  ;;  %v1320_v38 = vcombine.low %v1290_v27, %v1306_v25  ;;  %v1321_v39 = vcombine.high %v1290_v27, %v1306_v25 }
 0x33c   : > { %v1285_v35 = vpop.permute.xlu1 %1284 }
 0x33d   : > { %v1314_v42 = vpack.i.b16 %v1287_v30, %v1285_v35  ;;  %v1316_v43 = vshrl.u32 %v1285_v35, 16  ;;  %v1328_v50 = vrot.slane %v1320_v38, %v5093_v34  ;;  %v1335_v51 = vrot.slane %v1321_v39, %v5093_v34 }
 0x33e   : > { %v1388_v52 = vcombine.low %v1294_v44, %v1310_v37  ;;  %v1389_v53 = vcombine.high %v1294_v44, %v1310_v37 }
 0x33f   : > { %v1318_v47 = vpack.i.b16 %v1317_v41, %v1316_v43  ;;  %v1336_v48 = vcombine.low %v1298_v40, %v1314_v42  ;;  %v1337_v49 = vcombine.high %v1298_v40, %v1314_v42 }
 0x340   : > { %v1396_v62 = vrot.slane %v1388_v52, %v5093_v34  ;;  %v1403_v63 = vrot.slane %v1389_v53, %v5093_v34 }
 0x341   : > { %v1344_v54 = vrot.slane %v1336_v48, %v5093_v34  ;;  %v1351_v55 = vrot.slane %v1337_v49, %v5093_v34  ;;  %v1404_v56 = vcombine.low %v1302_v46, %v1318_v47  ;;  %v1405_v57 = vcombine.high %v1302_v46, %v1318_v47 }
 0x343   : > { %v1352_v58 = vcombine.low %v1328_v50, %v1344_v54  ;;  %v1353_v59 = vcombine.high %v1328_v50, %v1344_v54  ;;  %v1368_v60 = vcombine.low %v1335_v51, %v1351_v55  ;;  %v1369_v61 = vcombine.high %v1335_v51, %v1351_v55 }
 0x344   : > { %v1412_v0 = vrot.slane %v1404_v56, %v5093_v34  ;;  %v1419_v1 = vrot.slane %v1405_v57, %v5093_v34 }
 0x345   : > { %v1360_v2 = vrot.slane %v1352_v58, %v5095_v45  ;;  %v1367_v5 = vrot.slane %v1353_v59, %v5095_v45  ;;  %v1376_v6 = vrot.slane %v1368_v60, %v5095_v45  ;;  %v1383_v7 = vrot.slane %v1369_v61, %v5095_v45 }
 0x346   : > { %v1420_v8 = vcombine.low %v1396_v62, %v1412_v0  ;;  %v1421_v9 = vcombine.high %v1396_v62, %v1412_v0  ;;  %v1436_v10 = vcombine.low %v1403_v63, %v1419_v1  ;;  %v1437_v11 = vcombine.high %v1403_v63, %v1419_v1 }
 0x347   : > { %v1456_v13 = vcombine.low %v1360_v2, %v1367_v5  ;;  %v3855_v14 = vcombine.high %v1360_v2, %v1367_v5  ;;  %v1472_v15 = vcombine.low %v1376_v6, %v1383_v7  ;;  %v3856_v16 = vcombine.high %v1376_v6, %v1383_v7 }
 0x348   : > { %v1428_v17 = vrot.slane %v1420_v8, %v5095_v45  ;;  %v1435_v18 = vrot.slane %v1421_v9, %v5095_v45  ;;  %v1444_v19 = vrot.slane %v1436_v10, %v5095_v45  ;;  %v1451_v20 = vrot.slane %v1437_v11, %v5095_v45 }
 0x349   : > { %v5114_v21 = vrot.slane %v1456_v13, %v5093_v34  ;;  %v5117_v22 = vrot.slane %v3855_v14, %v5093_v34  ;;  %v5120_v23 = vrot.slane %v1472_v15, %v5093_v34  ;;  %v5123_v24 = vrot.slane %v3856_v16, %v5093_v34 }
 0x34a   : > { %v1524_v25 = vcombine.low %v1428_v17, %v1435_v18  ;;  %v3857_v26 = vcombine.high %v1428_v17, %v1435_v18  ;;  %v1540_v27 = vcombine.low %v1444_v19, %v1451_v20  ;;  %v3858_v28 = vcombine.high %v1444_v19, %v1451_v20 }
 0x34b   : > { %v1488_v29 = vcombine.low %v5114_v21, %v5117_v22  ;;  %v1504_v30 = vcombine.low %v5120_v23, %v5123_v24  ;;  %v948_v58 = vshrl.u32 %v5073_v12, 16 }
 0x34c   : > { %v5130_v31 = vrot.slane %v1524_v25, %v5093_v34  ;;  %v5133_v32 = vrot.slane %v3857_v26, %v5093_v34  ;;  %v5136_v33 = vrot.slane %v1540_v27, %v5093_v34  ;;  %v5139_v35 = vrot.slane %v3858_v28, %v5093_v34 }
 0x34d   : > { %v5146_v40 = vrot.slane %v1488_v29, %v5095_v45  ;;  %v5149_v41 = vrot.slane %v1504_v30, %v5095_v45 }
 0x34e   : > { %v1556_v36 = vcombine.low %v5130_v31, %v5133_v32  ;;  %v1572_v37 = vcombine.low %v5136_v33, %v5139_v35 }
 0x34f   : > { %v5159_v46 = vcombine.low %v5146_v40, %v5149_v41 }
 0x350   : > { %v933_v38 = vpop.permute.xlu0 %932  ;;  %v931_v39 = vpop.permute.xlu1 %930  ;;  %v5152_v42 = vrot.slane %v1556_v36, %v5095_v45  ;;  %v5155_v43 = vrot.slane %v1572_v37, %v5095_v45 }
 0x351   : > { %v946_v54 = vpack.i.b16 %v931_v39, %v5073_v12  ;;  %v949_v55 = vshrl.u32 %v931_v39, 16  ;;  %v956_v61 = vshrl.u32 %v933_v38, 16 }
 0x352   : > { %v5163_v47 = vcombine.low %v5152_v42, %v5155_v43 }
 0x353   : > { %v950_v7 = vpack.i.b16 %v949_v55, %v948_v58 }
 0x354   : > { %v935_v44 = vpop.permute.xlu1 %934  ;;  %v937_v48 = vpop.permute.xlu0 %936  ;;  %v1594_v49 = vpack.i.b16 %v5163_v47, %v5159_v46 }
 0x355   : > { %v964_v56 = vshrl.u32 %v937_v48, 16  ;;  %v957_v59 = vshrl.u32 %v935_v44, 16  ;;  %v954_v1 = vpack.i.b16 %v935_v44, %v933_v38 }
 0x356   : > { %v1973_v50 = vsel %vm1968_vm1, %v1594_v49, 0 }
 0x357   : > { %4042 = vmatpush3.bf16.xpose.msra.mxu1 %v1973_v50  ;;  %v958_v8 = vpack.i.b16 %v957_v59, %v956_v61 }
 0x358   : > { %v939_v51 = vpop.permute.xlu1 %938  ;;  %4047 = vmatprep.subr.bf16.mxu1 %v4659_v4  ;;  %v941_v57 = vpop.permute.xlu0 %940 }
 0x359   : > { %v962_v52 = vpack.i.b16 %v939_v51, %v937_v48  ;;  %v965_v53 = vshrl.u32 %v939_v51, 16  ;;  %v972_v2 = vshrl.u32 %v941_v57, 16 }
 0x35b   : > { %v966_v62 = vpack.i.b16 %v965_v53, %v964_v56  ;;  %v976_v63 = vcombine.low %v946_v54, %v962_v52  ;;  %v977_v0 = vcombine.high %v946_v54, %v962_v52 }
 0x35c   : > { %v943_v60 = vpop.permute.xlu1 %942 }
 0x35d   : > { %v970_v5 = vpack.i.b16 %v943_v60, %v941_v57  ;;  %v973_v6 = vshrl.u32 %v943_v60, 16  ;;  %v984_v13 = vrot.slane %v976_v63, %v5093_v34  ;;  %v991_v14 = vrot.slane %v977_v0, %v5093_v34 }
 0x35e   : > { %v1044_v12 = vcombine.low %v950_v7, %v966_v62  ;;  %v1045_v15 = vcombine.high %v950_v7, %v966_v62 }
 0x35f   : > { %v974_v9 = vpack.i.b16 %v973_v6, %v972_v2  ;;  %v992_v10 = vcombine.low %v954_v1, %v970_v5  ;;  %v993_v11 = vcombine.high %v954_v1, %v970_v5 }
 0x360   : > { %v1052_v28 = vrot.slane %v1044_v12, %v5093_v34  ;;  %v1059_v29 = vrot.slane %v1045_v15, %v5093_v34 }
 0x361   : > { %v1000_v16 = vrot.slane %v992_v10, %v5093_v34  ;;  %v1007_v17 = vrot.slane %v993_v11, %v5093_v34  ;;  %v1060_v18 = vcombine.low %v958_v8, %v974_v9  ;;  %v1061_v19 = vcombine.high %v958_v8, %v974_v9 }
 0x363   : > { %v1008_v20 = vcombine.low %v984_v13, %v1000_v16  ;;  %v1009_v25 = vcombine.high %v984_v13, %v1000_v16  ;;  %v1024_v26 = vcombine.low %v991_v14, %v1007_v17  ;;  %v1025_v27 = vcombine.high %v991_v14, %v1007_v17 }
 0x364   : > { %v1068_v30 = vrot.slane %v1060_v18, %v5093_v34  ;;  %v1075_v36 = vrot.slane %v1061_v19, %v5093_v34  ;;  %v1596_v13 = vshrl.u32 %v5163_v47, 16  ;;  %v1595_v19 = vshrl.u32 %v5159_v46, 16 }
 0x365   : > { %v1016_v37 = vrot.slane %v1008_v20, %v5095_v45  ;;  %v1023_v38 = vrot.slane %v1009_v25, %v5095_v45  ;;  %v1032_v39 = vrot.slane %v1024_v26, %v5095_v45  ;;  %v1039_v44 = vrot.slane %v1025_v27, %v5095_v45 }
 0x366   : > { %v1076_v48 = vcombine.low %v1052_v28, %v1068_v30  ;;  %v1077_v49 = vcombine.high %v1052_v28, %v1068_v30  ;;  %v1092_v50 = vcombine.low %v1059_v29, %v1075_v36  ;;  %v1093_v51 = vcombine.high %v1059_v29, %v1075_v36 }
 0x367   : > { %v1112_v52 = vcombine.low %v1016_v37, %v1023_v38  ;;  %v3851_v53 = vcombine.high %v1016_v37, %v1023_v38  ;;  %v1128_v54 = vcombine.low %v1032_v39, %v1039_v44  ;;  %v3852_v55 = vcombine.high %v1032_v39, %v1039_v44 }
 0x368   : > { %v1084_v56 = vrot.slane %v1076_v48, %v5095_v45  ;;  %v1091_v57 = vrot.slane %v1077_v49, %v5095_v45  ;;  %v1100_v58 = vrot.slane %v1092_v50, %v5095_v45  ;;  %v1107_v59 = vrot.slane %v1093_v51, %v5095_v45 }
 0x369   : > { %v5188_v60 = vrot.slane %v1112_v52, %v5093_v34  ;;  %v5191_v61 = vrot.slane %v3851_v53, %v5093_v34  ;;  %v5194_v62 = vrot.slane %v1128_v54, %v5093_v34  ;;  %v5197_v63 = vrot.slane %v3852_v55, %v5093_v34 }
 0x36a   : > { %v1180_v0 = vcombine.low %v1084_v56, %v1091_v57  ;;  %v3853_v1 = vcombine.high %v1084_v56, %v1091_v57  ;;  %v1196_v2 = vcombine.low %v1100_v58, %v1107_v59  ;;  %v3854_v5 = vcombine.high %v1100_v58, %v1107_v59 }
 0x36b   : > { %v1144_v6 = vcombine.low %v5188_v60, %v5191_v61  ;;  %v1160_v7 = vcombine.low %v5194_v62, %v5197_v63  ;;  %v1597_v26 = vpack.i.b16 %v1596_v13, %v1595_v19  ;;  %v1589_v28 = vcombine.high %v5152_v42, %v5155_v43 }
 0x36c   : > { %v1187_v8 = vrot.slane %v1180_v0, %v5093_v34  ;;  %v1195_v9 = vrot.slane %v3853_v1, %v5093_v34  ;;  %v1203_v10 = vrot.slane %v1196_v2, %v5093_v34  ;;  %v1211_v11 = vrot.slane %v3854_v5, %v5093_v34 }
 0x36d   : > { %v1152_v15 = vrot.slane %v1144_v6, %v5095_v45  ;;  %v1168_v16 = vrot.slane %v1160_v7, %v5095_v45  ;;  %v2020_v47 = vsel %vm1968_vm1, %v1597_v26, 0  ;;  %v1521_v46 = vcombine.high %v5146_v40, %v5149_v41 }
 0x36e   : > { %v1212_v14 = vcombine.low %v1187_v8, %v1195_v9  ;;  %v1228_v12 = vcombine.low %v1203_v10, %v1211_v11  ;;  %v1602_v39 = vshrl.u32 %v1589_v28, 16  ;;  %v1557_v42 = vcombine.high %v5130_v31, %v5133_v32 }
 0x36f   : > { %v1176_v20 = vcombine.low %v1152_v15, %v1168_v16  ;;  %v1600_v36 = vpack.i.b16 %v1589_v28, %v1521_v46  ;;  %v1573_v43 = vcombine.high %v5136_v33, %v5139_v35  ;;  %v1601_v41 = vshrl.u32 %v1521_v46, 16 }
 0x370   : > { %v1220_v17 = vrot.slane %v1212_v14, %v5095_v45  ;;  %v1236_v18 = vrot.slane %v1228_v12, %v5095_v45  ;;  %v1489_v44 = vcombine.high %v5114_v21, %v5117_v22  ;;  %v1505_v48 = vcombine.high %v5120_v23, %v5123_v24 }
 0x371   : > { %v1251_v30 = vshrl.u32 %v1176_v20, 16  ;;  %v2067_v38 = vsel %vm1968_vm1, %v1600_v36, 0  ;;  %v1177_v49 = vcombine.high %v1152_v15, %v1168_v16  ;;  %v1603_v50 = vpack.i.b16 %v1602_v39, %v1601_v41 }
 0x372   : > { %v1244_v25 = vcombine.low %v1220_v17, %v1236_v18  ;;  %v1245_v40 = vcombine.high %v1220_v17, %v1236_v18  ;;  %v1571_v31 = vrot.slane %v1557_v42, %v5095_v45  ;;  %v1587_v32 = vrot.slane %v1573_v43, %v5095_v45 }
 0x373   : > { %v1503_v35 = vrot.slane %v1489_v44, %v5095_v45  ;;  %v1519_v51 = vrot.slane %v1505_v48, %v5095_v45  ;;  %v2114_v52 = vsel %vm1968_vm1, %v1603_v50, 0  ;;  %v1213_v21 = vcombine.high %v1187_v8, %v1195_v9 }
 0x374   : > { %v1250_v27 = vpack.i.b16 %v1244_v25, %v1176_v20  ;;  %v1252_v29 = vshrl.u32 %v1244_v25, 16  ;;  %v1256_v33 = vpack.i.b16 %v1245_v40, %v1177_v49  ;;  %v1590_v53 = vcombine.low %v1571_v31, %v1587_v32 }
 0x375   : > { %v1229_v22 = vcombine.high %v1203_v10, %v1211_v11  ;;  %v1258_v23 = vshrl.u32 %v1245_v40, 16  ;;  %v1522_v24 = vcombine.low %v1503_v35, %v1519_v51  ;;  %v1145_v54 = vcombine.high %v5188_v60, %v5191_v61 }
 0x376   : > { %4044 = vmatmul.mubr.msk.bf16.vlgmr.msra.gmra.mrb[4].mxu1 %vm1968_vm1, %v1250_v27  ;;  %v1253_v37 = vpack.i.b16 %v1252_v29, %v1251_v30  ;;  %v1161_v55 = vcombine.high %v5194_v62, %v5197_v63  ;;  %v1257_v56 = vshrl.u32 %v1177_v49, 16  ;;  %v1227_v59 = vrot.slane %v1213_v21, %v5095_v45 }
 0x377   : > { %4048 = vmatpush3.bf16.xpose.msra.mxu1 %v2020_v47  ;;  %4049 = vmatprep.mubr.msk.bf16.mxu1 %vm4660_vm0, %v4659_v4  ;;  %v1606_v57 = vpack.i.b16 %v1590_v53, %v1522_v24  ;;  %v1243_v0 = vrot.slane %v1229_v22, %v5095_v45  ;;  %v1159_v2 = vrot.slane %v1145_v54, %v5095_v45  ;;  %v1608_v6 = vshrl.u32 %v1590_v53, 16 }
 0x378   : > { %4053 = vmatprep.subr.bf16.mxu1 %v4659_v4  ;;  %v1259_v58 = vpack.i.b16 %v1258_v23, %v1257_v56  ;;  %v1175_v5 = vrot.slane %v1161_v55, %v5095_v45  ;;  %v1607_v61 = vshrl.u32 %v1522_v24, 16  ;;  %v1591_v9 = vcombine.high %v1571_v31, %v1587_v32 }
 0x379   : > { %v2161_v1 = vsel %vm1968_vm1, %v1606_v57, 0  ;;  %v1246_v60 = vcombine.low %v1227_v59, %v1243_v0  ;;  %v1523_v11 = vcombine.high %v1503_v35, %v1519_v51  ;;  %v1247_v17 = vcombine.high %v1227_v59, %v1243_v0 }
 0x37a   : > { %v1178_v62 = vcombine.low %v1159_v2, %v1175_v5  ;;  %v1609_v63 = vpack.i.b16 %v1608_v6, %v1607_v61  ;;  %v1614_v16 = vshrl.u32 %v1591_v9, 16  ;;  %v1179_v19 = vcombine.high %v1159_v2, %v1175_v5 }
 0x37b   : > { %v1264_v10 = vshrl.u32 %v1246_v60, 16  ;;  %v1612_v14 = vpack.i.b16 %v1591_v9, %v1523_v11  ;;  %v1613_v18 = vshrl.u32 %v1523_v11, 16  ;;  %v1270_v27 = vshrl.u32 %v1247_v17, 16 }
 0x37c   : > { %v1262_v7 = vpack.i.b16 %v1246_v60, %v1178_v62  ;;  %v2208_v8 = vsel %vm1968_vm1, %v1609_v63, 0  ;;  %v1263_v13 = vshrl.u32 %v1178_v62, 16  ;;  %v1268_v25 = vpack.i.b16 %v1247_v17, %v1179_v19 }
 0x37d   : > { %v2255_v15 = vsel %vm1968_vm1, %v1612_v14, 0  ;;  %v1615_v20 = vpack.i.b16 %v1614_v16, %v1613_v18  ;;  %v1269_v47 = vshrl.u32 %v1179_v19, 16 }
 0x37e   : > { %4050 = vmatmul.mubr.msk.bf16.vlgmr.msra.gmra.mrb[8].mxu1 %vm1968_vm1, %v1253_v37  ;;  %v1265_v12 = vpack.i.b16 %v1264_v10, %v1263_v13 }
 0x37f   : > { %4054 = vmatpush3.bf16.xpose.msra.mxu1 %v2067_v38  ;;  %4055 = vmatprep.mubr.msk.bf16.mxu1 %vm4660_vm0, %v4659_v4  ;;  %v2302_v26 = vsel %vm1968_vm1, %v1615_v20, 0  ;;  %v1271_v28 = vpack.i.b16 %v1270_v27, %v1269_v47 }
 0x380   : > { %4059 = vmatprep.subr.bf16.mxu1 %v4659_v4 }
 0x386   : > { %4056 = vmatmul.mubr.msk.bf16.vlgmr.msra.gmra.mrb[12].mxu1 %vm1968_vm1, %v1256_v33 }
 0x387   : > { %4060 = vmatpush3.bf16.xpose.msra.mxu1 %v2114_v52  ;;  %4061 = vmatprep.mubr.msk.bf16.mxu1 %vm4660_vm0, %v4659_v4 }
 0x388   : > { %4065 = vmatprep.subr.bf16.mxu1 %v4659_v4 }
 0x38e   : > { %4062 = vmatmul.mubr.msk.bf16.vlgmr.msra.gmra.mrb[16].mxu1 %vm1968_vm1, %v1259_v58 }
 0x38f   : > { %4066 = vmatpush3.bf16.xpose.msra.mxu1 %v2161_v1  ;;  %4067 = vmatprep.mubr.msk.bf16.mxu1 %vm4660_vm0, %v4659_v4 }
 0x390   : > { %4071 = vmatprep.subr.bf16.mxu1 %v4659_v4 }
 0x396   : > { %4068 = vmatmul.mubr.msk.bf16.vlgmr.msra.gmra.mrb[20].mxu1 %vm1968_vm1, %v1262_v7 }
 0x397   : > { %4072 = vmatpush3.bf16.xpose.msra.mxu1 %v2208_v8  ;;  %4073 = vmatprep.mubr.msk.bf16.mxu1 %vm4660_vm0, %v4659_v4 }
 0x398   : > { %4077 = vmatprep.subr.bf16.mxu1 %v4659_v4 }
 0x39e   : > { %4074 = vmatmul.mubr.msk.bf16.vlgmr.msra.gmra.mrb[24].mxu1 %vm1968_vm1, %v1265_v12  ;;  %v5351_v12 = vpop.permute.xlu0 %1618 }
 0x39f   : > { %4078 = vmatpush3.bf16.xpose.msra.mxu1 %v2255_v15  ;;  %4079 = vmatprep.mubr.msk.bf16.mxu1 %vm4660_vm0, %v4659_v4 }
 0x3a0   : > { %4083 = vmatprep.subr.bf16.mxu1 %v4659_v4 }
 0x3a6   : > { %4080 = vmatmul.mubr.msk.bf16.vlgmr.msra.gmra.mrb[28].mxu1 %vm1968_vm1, %v1268_v25 }
 0x3a7   : > { %4084 = vmatpush3.bf16.xpose.msra.mxu1 %v2302_v26  ;;  %4085 = vmatprep.mubr.msk.bf16.mxu1 %vm4660_vm0, %v4659_v4 }
 0x3a8   : > { %4095 = vmatprep.subr.bf16.mxu1 %v4659_v4 }
 0x3ae   : > { %4086 = vmatmul.mubr.msk.bf16.vlgmr.msra.gmra.mrb[32].mxu1 %vm1968_vm1, %v1271_v28 }
 0x3af   : > { %4097 = vmatprep.mubr.msk.bf16.mxu1 %vm4660_vm0, %v4659_v4 }
 0x449   : > { %v5275_v29 = vpop.f32.mrb[4].mxu1 }
 0x44a   : > { %v4045_v46 = vpop.f32.mrb[5].mxu1  ;;  %v2345_v30 = vsel %vm1968_vm1, %v5275_v29, -inf }
 0x44b   : > { %2346 = vmax.xlane.f32.xlu0 %v2345_v30  ;;  %v5279_v36 = vpop.f32.mrb[6].mxu1 }
 0x44c   : > { %v4046_v37 = vpop.f32.mrb[7].mxu1  ;;  %v2348_v38 = vsel %vm1968_vm1, %v5279_v36, -inf }
 0x44d   : > { %2349 = vmax.xlane.f32.xlu1 %v2348_v38 }
 0x451   : > { %v5283_v39 = vpop.f32.mrb[8].mxu1 }
 0x452   : > { %v4051_v42 = vpop.f32.mrb[9].mxu1  ;;  %v2351_v43 = vsel %vm1968_vm1, %v5283_v39, -inf }
 0x453   : > { %2352 = vmax.xlane.f32.xlu0 %v2351_v43  ;;  %v5287_v40 = vpop.f32.mrb[10].mxu1 }
 0x454   : > { %v4052_v41 = vpop.f32.mrb[11].mxu1  ;;  %v2354_v44 = vsel %vm1968_vm1, %v5287_v40, -inf }
 0x457   : > { %2355 = vmax.xlane.f32.xlu0 %v2354_v44 }
 0x459   : > { %v5291_v48 = vpop.f32.mrb[12].mxu1 }
 0x45a   : > { %v4057_v49 = vpop.f32.mrb[13].mxu1  ;;  %v2357_v50 = vsel %vm1968_vm1, %v5291_v48, -inf }
 0x45b   : > { %2358 = vmax.xlane.f32.xlu0 %v2357_v50  ;;  %v5295_v31 = vpop.f32.mrb[14].mxu1 }
 0x45c   : > { %v4058_v32 = vpop.f32.mrb[15].mxu1  ;;  %v2360_v33 = vsel %vm1968_vm1, %v5295_v31, -inf }
 0x45d   : > { %2361 = vmax.xlane.f32.xlu1 %v2360_v33 }
 0x461   : > { %v5299_v35 = vpop.f32.mrb[16].mxu1 }
 0x462   : > { %v4063_v51 = vpop.f32.mrb[17].mxu1  ;;  %v2363_v52 = vsel %vm1968_vm1, %v5299_v35, -inf }
 0x463   : > { %2364 = vmax.xlane.f32.xlu0 %v2363_v52  ;;  %v5303_v53 = vpop.f32.mrb[18].mxu1 }
 0x464   : > { %v4064_v21 = vpop.f32.mrb[19].mxu1  ;;  %v2366_v22 = vsel %vm1968_vm1, %v5303_v53, -inf }
 0x465   : > { %2367 = vmax.xlane.f32.xlu1 %v2366_v22 }
 0x469   : > { %v5307_v23 = vpop.f32.mrb[20].mxu1 }
 0x46a   : > { %v4069_v24 = vpop.f32.mrb[21].mxu1  ;;  %v2369_v54 = vsel %vm1968_vm1, %v5307_v23, -inf }
 0x46b   : > { %2370 = vmax.xlane.f32.xlu0 %v2369_v54  ;;  %v5311_v55 = vpop.f32.mrb[22].mxu1 }
 0x46c   : > { %v4070_v56 = vpop.f32.mrb[23].mxu1  ;;  %v2372_v57 = vsel %vm1968_vm1, %v5311_v55, -inf }
 0x46d   : > { %2373 = vmax.xlane.f32.xlu1 %v2372_v57 }
 0x471   : > { %v5315_v58 = vpop.f32.mrb[24].mxu1 }
 0x472   : > { %v4075_v59 = vpop.f32.mrb[25].mxu1  ;;  %v2375_v0 = vsel %vm1968_vm1, %v5315_v58, -inf }
 0x473   : > { %2376 = vmax.xlane.f32.xlu0 %v2375_v0  ;;  %v5319_v1 = vpop.f32.mrb[26].mxu1 }
 0x474   : > { %v4076_v2 = vpop.f32.mrb[27].mxu1  ;;  %v2378_v5 = vsel %vm1968_vm1, %v5319_v1, -inf }
 0x475   : > { %2379 = vmax.xlane.f32.xlu1 %v2378_v5 }
 0x479   : > { %v5323_v6 = vpop.f32.mrb[28].mxu1 }
 0x47a   : > { %v4081_v60 = vpop.f32.mrb[29].mxu1  ;;  %v2381_v61 = vsel %vm1968_vm1, %v5323_v6, -inf }
 0x47b   : > { %2382 = vmax.xlane.f32.xlu0 %v2381_v61  ;;  %v5327_v62 = vpop.f32.mrb[30].mxu1 }
 0x47c   : > { %v4082_v63 = vpop.f32.mrb[31].mxu1  ;;  %v2384_v7 = vsel %vm1968_vm1, %v5327_v62, -inf }
 0x47d   : > { %2385 = vmax.xlane.f32.xlu1 %v2384_v7 }
 0x481   : > { %v5331_v8 = vpop.f32.mrb[32].mxu1 }
 0x482   : > { %v4087_v9 = vpop.f32.mrb[33].mxu1  ;;  %v2387_v10 = vsel %vm1968_vm1, %v5331_v8, -inf }
 0x483   : > { %2388 = vmax.xlane.f32.xlu0 %v2387_v10  ;;  %v5335_v11 = vpop.f32.mrb[34].mxu1 }
 0x484   : > { %v4088_v13 = vpop.f32.mrb[35].mxu1  ;;  %v2390_v14 = vsel %vm1968_vm1, %v5335_v11, -inf }
 0x485   : > { %2391 = vmax.xlane.f32.xlu1 %v2390_v14 }
 0x496   : > { %1620 = vrot.lane.b32.xlu1 %v5054_v3, %s4661_s17 }
 0x499   : > { %1626 = vrot.lane.b32.xlu0 %v5054_v3, %s4664_s12 }
 0x49a   : > { %1622 = vrot.lane.b32.xlu1 %v5054_v3, %s4663_s2 }
 0x49d   : > { %1630 = vrot.lane.b32.xlu0 %v5054_v3, %s4666_s18 }
 0x49e   : > { %1624 = vrot.lane.b32.xlu1 %v5054_v3, %s4665_s16 }
 0x4a2   : > { %1628 = vrot.lane.b32.xlu1 %v5054_v3, %s4667_s20 }
 0x4d8   : > { %v2347_v15 = vpop.xlane.xlu0 %2346 }
 0x4d9   : > { %v2393_v16 = vsub.f32 %v5275_v29, %v2347_v15 }
 0x4da   : > { %v2350_v17 = vpop.xlane.xlu1 %2349 }
 0x4db   : > { %v2409_v18 = vmul.f32 1.442695, %v2393_v16  ;;  %v2394_v19 = vsub.f32 %v5279_v36, %v2350_v17 }
 0x4dd   : > { %4348 = vpow2.f32 %v2409_v18  ;;  %v2411_v20 = vmul.f32 1.442695, %v2394_v19 }
 0x4df   : > { %4350 = vpow2.f32 %v2411_v20 }
 0x4e0   : > { %v2353_v25 = vpop.xlane.xlu0 %2352 }
 0x4e1   : > { %v2395_v26 = vsub.f32 %v5283_v39, %v2353_v25 }
 0x4e3   : > { %v2413_v27 = vmul.f32 1.442695, %v2395_v26 }
 0x4e4   : > { %v2356_v47 = vpop.xlane.xlu0 %2355 }
 0x4e5   : > { %4352 = vpow2.f32 %v2413_v27  ;;  %v2396_v28 = vsub.f32 %v5287_v40, %v2356_v47 }
 0x4e7   : > { %v5357_v46 = vpop.eup %4348  ;;  %v2415_v30 = vmul.f32 1.442695, %v2396_v28 }
 0x4e8   : > { %v2359_v37 = vpop.xlane.xlu0 %2358  ;;  %v2441_v29 = vsel %vm1968_vm1, %v5357_v46, 0.0 }
 0x4e9   : > { %v5361_v38 = vpop.eup %4350  ;;  %4354 = vpow2.f32 %v2415_v30  ;;  %v2397_v36 = vsub.f32 %v5291_v48, %v2359_v37  ;;  %2442 = vadd.xlane.f32.xlu1 %v2441_v29 }
 0x4ea   : > { %v2362_v42 = vpop.xlane.xlu1 %2361  ;;  %v2444_v39 = vsel %vm1968_vm1, %v5361_v38, 0.0 }
 0x4eb   : > { %v2417_v43 = vmul.f32 1.442695, %v2397_v36  ;;  %v2398_v40 = vsub.f32 %v5295_v31, %v2362_v42  ;;  %2445 = vadd.xlane.f32.xlu0 %v2444_v39 }
 0x4ed   : > { %4356 = vpow2.f32 %v2417_v43  ;;  %v2419_v41 = vmul.f32 1.442695, %v2398_v40 }
 0x4ef   : > { %v5367_v44 = vpop.eup %4352  ;;  %4358 = vpow2.f32 %v2419_v41 }
 0x4f0   : > { %v2365_v49 = vpop.xlane.xlu0 %2364  ;;  %v2447_v50 = vsel %vm1968_vm1, %v5367_v44, 0.0 }
 0x4f1   : > { %v2399_v48 = vsub.f32 %v5299_v35, %v2365_v49  ;;  %2448 = vadd.xlane.f32.xlu0 %v2447_v50 }
 0x4f2   : > { %v2368_v32 = vpop.xlane.xlu1 %2367 }
 0x4f3   : > { %v5372_v33 = vpop.eup %4354  ;;  %v2421_v51 = vmul.f32 1.442695, %v2399_v48  ;;  %v2400_v52 = vsub.f32 %v5303_v53, %v2368_v32 }
 0x4f4   : > { %v2450_v31 = vsel %vm1968_vm1, %v5372_v33, 0.0 }
 0x4f5   : > { %4360 = vpow2.f32 %v2421_v51  ;;  %v2423_v21 = vmul.f32 1.442695, %v2400_v52  ;;  %2451 = vadd.xlane.f32.xlu0 %v2450_v31  ;;  %v1634_v31 = vpack.i.b16 %v5351_v12, %v5054_v3 }
 0x4f7   : > { %v5377_v22 = vpop.eup %4356  ;;  %4362 = vpow2.f32 %v2423_v21  ;;  %v1637_v21 = vshrl.u32 %v5351_v12, 16 }
 0x4f8   : > { %v2371_v24 = vpop.xlane.xlu0 %2370  ;;  %v2453_v35 = vsel %vm1968_vm1, %v5377_v22, 0.0 }
 0x4f9   : > { %v5381_v54 = vpop.eup %4358  ;;  %v2401_v56 = vsub.f32 %v5307_v23, %v2371_v24  ;;  %2454 = vadd.xlane.f32.xlu1 %v2453_v35 }
 0x4fa   : > { %v2374_v57 = vpop.xlane.xlu1 %2373  ;;  %v2456_v53 = vsel %vm1968_vm1, %v5381_v54, 0.0 }
 0x4fb   : > { %v2425_v59 = vmul.f32 1.442695, %v2401_v56  ;;  %v2402_v0 = vsub.f32 %v5311_v55, %v2374_v57  ;;  %2457 = vadd.xlane.f32.xlu0 %v2456_v53  ;;  %v1636_v56 = vshrl.u32 %v5054_v3, 16 }
 0x4fd   : > { %4364 = vpow2.f32 %v2425_v59  ;;  %v2427_v2 = vmul.f32 1.442695, %v2402_v0  ;;  %v1638_v12 = vpack.i.b16 %v1637_v21, %v1636_v56 }
 0x4ff   : > { %v5387_v5 = vpop.eup %4360  ;;  %4366 = vpow2.f32 %v2427_v2 }
 0x500   : > { %v2377_v60 = vpop.xlane.xlu0 %2376  ;;  %v2459_v61 = vsel %vm1968_vm1, %v5387_v5, 0.0 }
 0x501   : > { %v5391_v63 = vpop.eup %4362  ;;  %v2403_v23 = vsub.f32 %v5315_v58, %v2377_v60  ;;  %2460 = vadd.xlane.f32.xlu1 %v2459_v61 }
 0x502   : > { %v2380_v7 = vpop.xlane.xlu1 %2379  ;;  %v2462_v9 = vsel %vm1968_vm1, %v5391_v63, 0.0 }
 0x503   : > { %v2429_v55 = vmul.f32 1.442695, %v2403_v23  ;;  %v2404_v10 = vsub.f32 %v5319_v1, %v2380_v7  ;;  %2463 = vadd.xlane.f32.xlu0 %v2462_v9 }
 0x505   : > { %4368 = vpow2.f32 %v2429_v55  ;;  %v2431_v13 = vmul.f32 1.442695, %v2404_v10 }
 0x507   : > { %v5397_v14 = vpop.eup %4364  ;;  %4370 = vpow2.f32 %v2431_v13 }
 0x508   : > { %v2383_v15 = vpop.xlane.xlu0 %2382  ;;  %v2465_v16 = vsel %vm1968_vm1, %v5397_v14, 0.0 }
 0x509   : > { %v5401_v17 = vpop.eup %4366  ;;  %v2405_v58 = vsub.f32 %v5323_v6, %v2383_v15  ;;  %2466 = vadd.xlane.f32.xlu1 %v2465_v16 }
 0x50a   : > { %v2386_v18 = vpop.xlane.xlu1 %2385  ;;  %v2468_v19 = vsel %vm1968_vm1, %v5401_v17, 0.0 }
 0x50b   : > { %v2433_v1 = vmul.f32 1.442695, %v2405_v58  ;;  %v2406_v20 = vsub.f32 %v5327_v62, %v2386_v18  ;;  %2469 = vadd.xlane.f32.xlu0 %v2468_v19 }
 0x50d   : > { %4372 = vpow2.f32 %v2433_v1  ;;  %v2435_v25 = vmul.f32 1.442695, %v2406_v20 }
 0x50f   : > { %v5407_v26 = vpop.eup %4368  ;;  %4374 = vpow2.f32 %v2435_v25 }
 0x510   : > { %v2389_v27 = vpop.xlane.xlu0 %2388  ;;  %v2471_v47 = vsel %vm1968_vm1, %v5407_v26, 0.0 }
 0x511   : > { %v5411_v28 = vpop.eup %4370  ;;  %v2407_v6 = vsub.f32 %v5331_v8, %v2389_v27  ;;  %2472 = vadd.xlane.f32.xlu1 %v2471_v47 }
 0x512   : > { %v2392_v30 = vpop.xlane.xlu1 %2391  ;;  %v2474_v37 = vsel %vm1968_vm1, %v5411_v28, 0.0 }
 0x513   : > { %v2437_v62 = vmul.f32 1.442695, %v2407_v6  ;;  %v2408_v29 = vsub.f32 %v5335_v11, %v2392_v30  ;;  %2475 = vadd.xlane.f32.xlu0 %v2474_v37 }
 0x514   : > { %v1627_v49 = vpop.permute.xlu0 %1626 }
 0x515   : > { %4376 = vpow2.f32 %v2437_v62  ;;  %v2439_v36 = vmul.f32 1.442695, %v2408_v29  ;;  %v1653_v24 = vshrl.u32 %v1627_v49, 16 }
 0x516   : > { %v1621_v42 = vpop.permute.xlu1 %1620 }
 0x517   : > { %v5417_v39 = vpop.eup %4372  ;;  %4378 = vpow2.f32 %v2439_v36  ;;  %v1644_v0 = vshrl.u32 %v1621_v42, 16 }
 0x518   : > { %v2477_v43 = vsel %vm1968_vm1, %v5417_v39, 0.0  ;;  %v1631_v35 = vpop.permute.xlu0 %1630 }
 0x519   : > { %v5421_v40 = vpop.eup %4374  ;;  %2478 = vadd.xlane.f32.xlu1 %v2477_v43  ;;  %v1661_v23 = vshrl.u32 %v1631_v35, 16 }
 0x51a   : > { %v1623_v8 = vpop.permute.xlu1 %1622  ;;  %v2480_v41 = vsel %vm1968_vm1, %v5421_v40, 0.0 }
 0x51b   : > { %2481 = vadd.xlane.f32.xlu0 %v2480_v41  ;;  %v1645_v57 = vshrl.u32 %v1623_v8, 16  ;;  %v1642_v7 = vpack.i.b16 %v1623_v8, %v1621_v42 }
 0x51d   : > { %v1646_v10 = vpack.i.b16 %v1645_v57, %v1644_v0 }
 0x51e   : > { %v1625_v11 = vpop.permute.xlu1 %1624 }
 0x51f   : > { %v5425_v50 = vpop.eup %4376  ;;  %v1650_v48 = vpack.i.b16 %v1627_v49, %v1625_v11  ;;  %v1652_v32 = vshrl.u32 %v1625_v11, 16 }
 0x520   : > { %v2483_v51 = vsel %vm1968_vm1, %v5425_v50, 0.0 }
 0x521   : > { %v5429_v52 = vpop.eup %4378  ;;  %2484 = vadd.xlane.f32.xlu1 %v2483_v51  ;;  %v1654_v2 = vpack.i.b16 %v1653_v24, %v1652_v32  ;;  %v1664_v60 = vcombine.low %v1634_v31, %v1650_v48  ;;  %v1665_v61 = vcombine.high %v1634_v31, %v1650_v48 }
 0x522   : > { %v1629_v53 = vpop.permute.xlu1 %1628  ;;  %v2486_v59 = vsel %vm1968_vm1, %v5429_v52, 0.0 }
 0x523   : > { %2487 = vadd.xlane.f32.xlu0 %v2486_v59  ;;  %v1658_v9 = vpack.i.b16 %v1631_v35, %v1629_v53  ;;  %v1660_v55 = vshrl.u32 %v1629_v53, 16  ;;  %v1672_v3 = vrot.slane %v1664_v60, %v5093_v34  ;;  %v1679_v58 = vrot.slane %v1665_v61, %v5093_v34 }
 0x524   : > { %v1732_v18 = vcombine.low %v1638_v12, %v1654_v2  ;;  %v1733_v19 = vcombine.high %v1638_v12, %v1654_v2 }
 0x525   : > { %v1662_v13 = vpack.i.b16 %v1661_v23, %v1660_v55  ;;  %v1680_v15 = vcombine.low %v1642_v7, %v1658_v9  ;;  %v1681_v16 = vcombine.high %v1642_v7, %v1658_v9 }
 0x526   : > { %v1740_v62 = vrot.slane %v1732_v18, %v5093_v34  ;;  %v1747_v29 = vrot.slane %v1733_v19, %v5093_v34 }
 0x527   : > { %v1688_v1 = vrot.slane %v1680_v15, %v5093_v34  ;;  %v1695_v20 = vrot.slane %v1681_v16, %v5093_v34  ;;  %v1748_v25 = vcombine.low %v1646_v10, %v1662_v13  ;;  %v1749_v27 = vcombine.high %v1646_v10, %v1662_v13 }
 0x529   : > { %v1696_v47 = vcombine.low %v1672_v3, %v1688_v1  ;;  %v1697_v6 = vcombine.high %v1672_v3, %v1688_v1  ;;  %v1712_v30 = vcombine.low %v1679_v58, %v1695_v20  ;;  %v1713_v37 = vcombine.high %v1679_v58, %v1695_v20 }
 0x52a   : > { %v1756_v36 = vrot.slane %v1748_v25, %v5093_v34  ;;  %v1763_v42 = vrot.slane %v1749_v27, %v5093_v34 }
 0x52b   : > { %v1704_v43 = vrot.slane %v1696_v47, %v5095_v45  ;;  %v1711_v8 = vrot.slane %v1697_v6, %v5095_v45  ;;  %v1720_v41 = vrot.slane %v1712_v30, %v5095_v45  ;;  %v1727_v49 = vrot.slane %v1713_v37, %v5095_v45 }
 0x52c   : > { %v1764_v11 = vcombine.low %v1740_v62, %v1756_v36  ;;  %v1765_v48 = vcombine.high %v1740_v62, %v1756_v36  ;;  %v1780_v32 = vcombine.low %v1747_v29, %v1763_v42  ;;  %v1781_v51 = vcombine.high %v1747_v29, %v1763_v42 }
 0x52d   : > { %v1800_v31 = vcombine.low %v1704_v43, %v1711_v8  ;;  %v3859_v21 = vcombine.high %v1704_v43, %v1711_v8  ;;  %v1816_v24 = vcombine.low %v1720_v41, %v1727_v49  ;;  %v3860_v35 = vcombine.high %v1720_v41, %v1727_v49 }
 0x52e   : > { %v1772_v56 = vrot.slane %v1764_v11, %v5095_v45  ;;  %v1779_v57 = vrot.slane %v1765_v48, %v5095_v45  ;;  %v1788_v53 = vrot.slane %v1780_v32, %v5095_v45  ;;  %v1795_v59 = vrot.slane %v1781_v51, %v5095_v45 }
 0x52f   : > { %v1807_v0 = vrot.slane %v1800_v31, %v5093_v34  ;;  %v1815_v2 = vrot.slane %v3859_v21, %v5093_v34  ;;  %v1823_v60 = vrot.slane %v1816_v24, %v5093_v34  ;;  %v1831_v61 = vrot.slane %v3860_v35, %v5093_v34 }
 0x530   : > { %v1868_v23 = vcombine.low %v1772_v56, %v1779_v57  ;;  %v3861_v7 = vcombine.high %v1772_v56, %v1779_v57  ;;  %v1884_v9 = vcombine.low %v1788_v53, %v1795_v59  ;;  %v3862_v55 = vcombine.high %v1788_v53, %v1795_v59 }
 0x531   : > { %v1832_v12 = vcombine.low %v1807_v0, %v1815_v2  ;;  %v1848_v10 = vcombine.low %v1823_v60, %v1831_v61  ;;  %v1833_v13 = vcombine.high %v1807_v0, %v1815_v2  ;;  %v1849_v15 = vcombine.high %v1823_v60, %v1831_v61 }
 0x532   : > { %v1875_v16 = vrot.slane %v1868_v23, %v5093_v34  ;;  %v1883_v3 = vrot.slane %v3861_v7, %v5093_v34  ;;  %v1891_v58 = vrot.slane %v1884_v9, %v5093_v34  ;;  %v1899_v18 = vrot.slane %v3862_v55, %v5093_v34 }
 0x533   : > { %v1840_v19 = vrot.slane %v1832_v12, %v5095_v45  ;;  %v1856_v1 = vrot.slane %v1848_v10, %v5095_v45  ;;  %v1847_v20 = vrot.slane %v1833_v13, %v5095_v45  ;;  %v1863_v25 = vrot.slane %v1849_v15, %v5095_v45 }
 0x534   : > { %v1900_v27 = vcombine.low %v1875_v16, %v1883_v3  ;;  %v1916_v47 = vcombine.low %v1891_v58, %v1899_v18  ;;  %v1901_v6 = vcombine.high %v1875_v16, %v1883_v3  ;;  %v1917_v30 = vcombine.high %v1891_v58, %v1899_v18 }
 0x535   : > { %v1864_v37 = vcombine.low %v1840_v19, %v1856_v1  ;;  %v1865_v62 = vcombine.high %v1840_v19, %v1856_v1  ;;  %v5465_v29 = vcombine.low %v1847_v20, %v1863_v25  ;;  %v5467_v36 = vcombine.high %v1847_v20, %v1863_v25 }
 0x536   : > { %v1908_v42 = vrot.slane %v1900_v27, %v5095_v45  ;;  %v1924_v43 = vrot.slane %v1916_v47, %v5095_v45  ;;  %v1915_v8 = vrot.slane %v1901_v6, %v5095_v45  ;;  %v1931_v41 = vrot.slane %v1917_v30, %v5095_v45 }
 0x537   : > { %v1940_v51 = vshrl.u32 %v1864_v37, 16  ;;  %v1948_v31 = vshrl.u32 %v1865_v62, 16  ;;  %v1956_v21 = vshrl.u32 %v5465_v29, 16  ;;  %v1964_v24 = vshrl.u32 %v5467_v36, 16 }
 0x538   : > { %v1932_v49 = vcombine.low %v1908_v42, %v1924_v43  ;;  %v1933_v11 = vcombine.high %v1908_v42, %v1924_v43  ;;  %v5473_v48 = vcombine.low %v1915_v8, %v1931_v41  ;;  %v5475_v32 = vcombine.high %v1915_v8, %v1931_v41 }
 0x53a   : > { %v1938_v35 = vpack.i.b16 %v1932_v49, %v1864_v37  ;;  %v1941_v56 = vshrl.u32 %v1932_v49, 16  ;;  %v1946_v57 = vpack.i.b16 %v1933_v11, %v1865_v62  ;;  %v1949_v53 = vshrl.u32 %v1933_v11, 16 }
 0x53b   : > { %v1954_v59 = vpack.i.b16 %v5473_v48, %v5465_v29  ;;  %v1957_v0 = vshrl.u32 %v5473_v48, 16  ;;  %v1962_v2 = vpack.i.b16 %v5475_v32, %v5467_v36  ;;  %v1965_v60 = vshrl.u32 %v5475_v32, 16 }
 0x53c   : > { %4090 = vmatpush3.bf16.msra.mxu0 %v1938_v35  ;;  %v1942_v61 = vpack.i.b16 %v1941_v56, %v1940_v51  ;;  %v1950_v23 = vpack.i.b16 %v1949_v53, %v1948_v31 }
 0x53d   : > { %4101 = vmatprep.subr.bf16.mxu0 %v4659_v4  ;;  %v1958_v7 = vpack.i.b16 %v1957_v0, %v1956_v21  ;;  %v5486_v9 = vpack.i.b16 %v1965_v60, %v1964_v24 }
 0x53e   : > { %4096 = vmatpush3.bf16.msra.mxu1 %v1942_v61 }
 0x53f   : > { %4107 = vmatprep.subr.bf16.mxu1 %v4659_v4 }
 0x576   : > { %v2443_v55 = vpop.xlane.xlu1 %2442 }
 0x577   : > { %4380 = vrcp.f32 %v2443_v55 }
 0x578   : > { %v2446_v12 = vpop.xlane.xlu0 %2445 }
 0x579   : > { %4382 = vrcp.f32 %v2446_v12 }
 0x57e   : > { %v2449_v10 = vpop.xlane.xlu0 %2448 }
 0x57f   : > { %4384 = vrcp.f32 %v2449_v10 }
 0x581   : > { %v4381_v13 = vpop.eup %4380 }
 0x582   : > { %v2452_v15 = vpop.xlane.xlu0 %2451  ;;  %v2505_v3 = vmul.f32 %v4381_v13, %v5357_v46 }
 0x583   : > { %v4383_v16 = vpop.eup %4382  ;;  %4386 = vrcp.f32 %v2452_v15 }
 0x584   : > { %v2506_v58 = vmul.f32 %v4383_v16, %v5361_v38 }
 0x586   : > { %v2455_v18 = vpop.xlane.xlu1 %2454  ;;  %v2521_v19 = vpack.c.bf16 %v2506_v58, %v2505_v3 }
 0x587   : > { %4388 = vrcp.f32 %v2455_v18 }
 0x588   : > { %v2458_v1 = vpop.xlane.xlu0 %2457  ;;  %4092 = vmatmul.mubr.msk.bf16.vlgmr.msra.gmra.mrb[8].mxu0 %vm1968_vm1, %v2521_v19 }
 0x589   : > { %4390 = vrcp.f32 %v2458_v1  ;;  %4102 = vmatpush3.bf16.msra.mxu0 %v1946_v57  ;;  %4103 = vmatprep.mubr.msk.bf16.mxu0 %vm4660_vm0, %v4659_v4  ;;  %v4385_v20 = vpop.eup %4384 }
 0x58a   : > { %4113 = vmatprep.subr.bf16.mxu0 %v4659_v4  ;;  %v2507_v27 = vmul.f32 %v4385_v20, %v5367_v44 }
 0x58d   : > { %v4387_v25 = vpop.eup %4386 }
 0x58e   : > { %v2508_v46 = vmul.f32 %v4387_v25, %v5372_v33  ;;  %v2461_v38 = vpop.xlane.xlu1 %2460 }
 0x58f   : > { %4392 = vrcp.f32 %v2461_v38 }
 0x590   : > { %v2464_v47 = vpop.xlane.xlu0 %2463  ;;  %v2522_v6 = vpack.c.bf16 %v2508_v46, %v2507_v27 }
 0x591   : > { %v4389_v30 = vpop.eup %4388  ;;  %4394 = vrcp.f32 %v2464_v47 }
 0x592   : > { %4098 = vmatmul.mubr.msk.bf16.vlgmr.msra.gmra.mrb[36].mxu1 %vm1968_vm1, %v2522_v6  ;;  %v2509_v62 = vmul.f32 %v4389_v30, %v5377_v22 }
 0x593   : > { %v4391_v37 = vpop.eup %4390  ;;  %4108 = vmatpush3.bf16.msra.mxu1 %v1950_v23  ;;  %4109 = vmatprep.mubr.msk.bf16.mxu1 %vm4660_vm0, %v4659_v4 }
 0x594   : > { %v2510_v29 = vmul.f32 %v4391_v37, %v5381_v54  ;;  %4119 = vmatprep.subr.bf16.mxu1 %v4659_v4 }
 0x596   : > { %v2467_v44 = vpop.xlane.xlu1 %2466  ;;  %v2523_v33 = vpack.c.bf16 %v2510_v29, %v2509_v62 }
 0x597   : > { %4396 = vrcp.f32 %v2467_v44 }
 0x598   : > { %v2470_v42 = vpop.xlane.xlu0 %2469  ;;  %4104 = vmatmul.mubr.msk.bf16.vlgmr.msra.gmra.mrb[12].mxu0 %vm1968_vm1, %v2523_v33 }
 0x599   : > { %v4393_v43 = vpop.eup %4392  ;;  %4398 = vrcp.f32 %v2470_v42  ;;  %4114 = vmatpush3.bf16.msra.mxu0 %v1954_v59  ;;  %4115 = vmatprep.mubr.msk.bf16.mxu0 %vm4660_vm0, %v4659_v4 }
 0x59a   : > { %4125 = vmatprep.subr.bf16.mxu0 %v4659_v4  ;;  %v2511_v22 = vmul.f32 %v4393_v43, %v5387_v5 }
 0x59b   : > { %v4395_v8 = vpop.eup %4394 }
 0x59c   : > { %v2512_v54 = vmul.f32 %v4395_v8, %v5391_v63 }
 0x59e   : > { %v2473_v41 = vpop.xlane.xlu1 %2472  ;;  %v2524_v49 = vpack.c.bf16 %v2512_v54, %v2511_v22 }
 0x59f   : > { %4400 = vrcp.f32 %v2473_v41 }
 0x5a0   : > { %v2476_v11 = vpop.xlane.xlu0 %2475  ;;  %4110 = vmatmul.mubr.msk.bf16.vlgmr.msra.gmra.mrb[40].mxu1 %vm1968_vm1, %v2524_v49 }
 0x5a1   : > { %v4397_v48 = vpop.eup %4396  ;;  %4402 = vrcp.f32 %v2476_v11  ;;  %4120 = vmatpush3.bf16.msra.mxu1 %v1958_v7  ;;  %4121 = vmatprep.mubr.msk.bf16.mxu1 %vm4660_vm0, %v4659_v4 }
 0x5a2   : > { %4131 = vmatprep.subr.bf16.mxu1 %v4659_v4  ;;  %v2513_v31 = vmul.f32 %v4397_v48, %v5397_v14 }
 0x5a3   : > { %v4399_v51 = vpop.eup %4398 }
 0x5a4   : > { %v2514_v5 = vmul.f32 %v4399_v51, %v5401_v17 }
 0x5a6   : > { %v2479_v63 = vpop.xlane.xlu1 %2478  ;;  %v2525_v21 = vpack.c.bf16 %v2514_v5, %v2513_v31 }
 0x5a7   : > { %4404 = vrcp.f32 %v2479_v63 }
 0x5a8   : > { %v2482_v24 = vpop.xlane.xlu0 %2481  ;;  %4116 = vmatmul.mubr.msk.bf16.vlgmr.msra.gmra.mrb[16].mxu0 %vm1968_vm1, %v2525_v21 }
 0x5a9   : > { %v4401_v35 = vpop.eup %4400  ;;  %4406 = vrcp.f32 %v2482_v24  ;;  %4126 = vmatpush3.bf16.msra.mxu0 %v1962_v2  ;;  %4127 = vmatprep.mubr.msk.bf16.mxu0 %vm4660_vm0, %v4659_v4 }
 0x5aa   : > { %4137 = vmatprep.subr.bf16.mxu0 %v4659_v4  ;;  %v2515_v17 = vmul.f32 %v4401_v35, %v5407_v26 }
 0x5ab   : > { %v4403_v14 = vpop.eup %4402 }
 0x5ac   : > { %v2516_v56 = vmul.f32 %v4403_v14, %v5411_v28 }
 0x5ae   : > { %v2485_v57 = vpop.xlane.xlu1 %2484  ;;  %v2526_v53 = vpack.c.bf16 %v2516_v56, %v2515_v17 }
 0x5af   : > { %4408 = vrcp.f32 %v2485_v57 }
 0x5b0   : > { %v2488_v59 = vpop.xlane.xlu0 %2487  ;;  %4122 = vmatmul.mubr.msk.bf16.vlgmr.msra.gmra.mrb[44].mxu1 %vm1968_vm1, %v2526_v53 }
 0x5b1   : > { %v4405_v0 = vpop.eup %4404  ;;  %4410 = vrcp.f32 %v2488_v59  ;;  %4132 = vmatpush3.bf16.msra.mxu1 %v5486_v9  ;;  %4133 = vmatprep.mubr.msk.bf16.mxu1 %vm4660_vm0, %v4659_v4 }
 0x5b2   : > { %v2517_v32 = vmul.f32 %v4405_v0, %v5417_v39 }
 0x5b3   : > { %v4407_v36 = vpop.eup %4406 }
 0x5b4   : > { %v2518_v26 = vmul.f32 %v4407_v36, %v5421_v40 }
 0x5b6   : > { %v2527_v2 = vpack.c.bf16 %v2518_v26, %v2517_v32 }
 0x5b8   : > { %4128 = vmatmul.mubr.msk.bf16.vlgmr.msra.gmra.mrb[20].mxu0 %vm1968_vm1, %v2527_v2 }
 0x5b9   : > { %v4409_v28 = vpop.eup %4408  ;;  %4153 = vmatprep.mubr.msk.bf16.mxu0 %vm4660_vm0, %v4659_v4 }
 0x5ba   : > { %v2519_v61 = vmul.f32 %v4409_v28, %v5425_v50 }
 0x5bb   : > { %v4411_v60 = vpop.eup %4410 }
 0x5bc   : > { %v2520_v23 = vmul.f32 %v4411_v60, %v5429_v52 }
 0x5be   : > { %v2528_v7 = vpack.c.bf16 %v2520_v23, %v2519_v61 }
 0x5c0   : > { %4134 = vmatmul.mubr.msk.bf16.vlgmr.msra.gmra.mrb[48].mxu1 %vm1968_vm1, %v2528_v7 }
 0x65b   : > { %v2566_v9 = vpop.f32.mrb[8].mxu0 }
 0x65c   : > { %v4093_v55 = vpop.f32.mrb[9].mxu0 }
 0x65d   : > { %v2569_v39 = vpop.f32.mrb[10].mxu0 }
 0x65e   : > { %v4094_v12 = vpop.f32.mrb[11].mxu0 }
 0x665   : > { %v2610_v40 = vpop.f32.mrb[36].mxu1 }
 0x666   : > { %v4099_v10 = vpop.f32.mrb[37].mxu1 }
 0x667   : > { %v2613_v13 = vpop.f32.mrb[38].mxu1 }
 0x668   : > { %v4100_v15 = vpop.f32.mrb[39].mxu1 }
 0x66b   : > { %v2654_v16 = vpop.f32.mrb[12].mxu0 }
 0x66c   : > { %v2881_v3 = vcombine.low %v2566_v9, %v2654_v16  ;;  %v2882_v58 = vcombine.high %v2566_v9, %v2654_v16  ;;  %v4105_v18 = vpop.f32.mrb[13].mxu0 }
 0x66d   : > { %v2657_v19 = vpop.f32.mrb[14].mxu0 }
 0x66e   : > { %v3017_v1 = vcombine.low %v2569_v39, %v2657_v19  ;;  %v3018_v50 = vcombine.high %v2569_v39, %v2657_v19  ;;  %v4106_v20 = vpop.f32.mrb[15].mxu0  ;;  %v2889_v38 = vrot.slane %v2881_v3, %v5093_v34  ;;  %v2896_v47 = vrot.slane %v2882_v58, %v5093_v34 }
 0x670   : > { %v3025_v22 = vrot.slane %v3017_v1, %v5093_v34  ;;  %v3032_v54 = vrot.slane %v3018_v50, %v5093_v34 }
 0x673   : > { %v2698_v52 = vpop.f32.mrb[40].mxu1 }
 0x674   : > { %v2897_v25 = vcombine.low %v2610_v40, %v2698_v52  ;;  %v2898_v27 = vcombine.high %v2610_v40, %v2698_v52  ;;  %v4111_v46 = vpop.f32.mrb[41].mxu1 }
 0x675   : > { %v2701_v6 = vpop.f32.mrb[42].mxu1 }
 0x676   : > { %v2905_v30 = vrot.slane %v2897_v25, %v5093_v34  ;;  %v2912_v37 = vrot.slane %v2898_v27, %v5093_v34  ;;  %v3033_v62 = vcombine.low %v2613_v13, %v2701_v6  ;;  %v3034_v29 = vcombine.high %v2613_v13, %v2701_v6  ;;  %v4112_v44 = vpop.f32.mrb[43].mxu1 }
 0x678   : > { %v2945_v33 = vcombine.low %v2889_v38, %v2905_v30  ;;  %v2946_v42 = vcombine.high %v2889_v38, %v2905_v30  ;;  %v2961_v43 = vcombine.low %v2896_v47, %v2912_v37  ;;  %v2962_v8 = vcombine.high %v2896_v47, %v2912_v37 }
 0x679   : > { %v3041_v41 = vrot.slane %v3033_v62, %v5093_v34  ;;  %v3048_v49 = vrot.slane %v3034_v29, %v5093_v34  ;;  %v4336_v62 = vld [vmem:[#allocation13] sm:$0xff]  }
 0x67a   : > { %v2953_v11 = vrot.slane %v2945_v33, %v5095_v45  ;;  %v2960_v48 = vrot.slane %v2946_v42, %v5095_v45  ;;  %v2969_v51 = vrot.slane %v2961_v43, %v5095_v45  ;;  %v2976_v31 = vrot.slane %v2962_v8, %v5095_v45  ;;  %4138 = vmatpush3.bf16.msra.mxu0 %v4336_v62 }
 0x67b   : > { %v3081_v5 = vcombine.low %v3025_v22, %v3041_v41  ;;  %v3082_v63 = vcombine.high %v3025_v22, %v3041_v41  ;;  %v3097_v21 = vcombine.low %v3032_v54, %v3048_v49  ;;  %v3098_v24 = vcombine.high %v3032_v54, %v3048_v49  ;;  %v5548_v35 = vpop.f32.mrb[16].mxu0  ;;  %v4337_v22 = vld [vmem:[#allocation13 + $0x8] sm:$0xff]   ;;  %4139 = vmatprep.subr.bf16.mxu0 %v4659_v4 }
 0x67c   : > { %v3879_v14 = vcombine.low %v2953_v11, %v2960_v48  ;;  %v3881_v17 = vcombine.high %v2953_v11, %v2960_v48  ;;  %v3883_v56 = vcombine.low %v2969_v51, %v2976_v31  ;;  %v3885_v57 = vcombine.high %v2969_v51, %v2976_v31  ;;  %v4117_v53 = vpop.f32.mrb[17].mxu0 }
 0x67d   : > { %v3089_v59 = vrot.slane %v3081_v5, %v5095_v45  ;;  %v3096_v0 = vrot.slane %v3082_v63, %v5095_v45  ;;  %v3105_v36 = vrot.slane %v3097_v21, %v5095_v45  ;;  %v3112_v32 = vrot.slane %v3098_v24, %v5095_v45  ;;  %v5554_v26 = vpop.f32.mrb[18].mxu0  ;;  %v4338_v5 = vld [vmem:[#allocation13 + $0x10] sm:$0xff]  }
 0x67e   : > { %v3161_v2 = vrot.slane %v3879_v14, %v5093_v34  ;;  %v3177_v28 = vrot.slane %v3881_v17, %v5093_v34  ;;  %v3193_v60 = vrot.slane %v3883_v56, %v5093_v34  ;;  %v3209_v61 = vrot.slane %v3885_v57, %v5093_v34  ;;  %v4118_v23 = vpop.f32.mrb[19].mxu0  ;;  %4140 = vmatpush3.bf16.msra.mxu0 %v4337_v22 }
 0x67f   : > { %v3887_v7 = vcombine.low %v3089_v59, %v3096_v0  ;;  %v3889_v9 = vcombine.high %v3089_v59, %v3096_v0  ;;  %v3891_v55 = vcombine.low %v3105_v36, %v3112_v32  ;;  %v3893_v39 = vcombine.high %v3105_v36, %v3112_v32  ;;  %4141 = vmatprep.subr.bf16.mxu0 %v4659_v4  ;;  %v4339_v59 = vld [vmem:[#allocation13 + $0x18] sm:$0xff]   ;;  %v4340_v0 = vld [vmem:[#allocation13 + $0x20] sm:$0xff]  }
 0x680   : > { %v3218_v12 = vcombine.high %v3161_v2, %v3177_v28  ;;  %v3250_v40 = vcombine.high %v3193_v60, %v3209_v61  ;;  %v3217_v10 = vcombine.low %v3161_v2, %v3177_v28  ;;  %v3249_v13 = vcombine.low %v3193_v60, %v3209_v61 }
 0x681   : > { %v3297_v15 = vrot.slane %v3887_v7, %v5093_v34  ;;  %v3313_v16 = vrot.slane %v3889_v9, %v5093_v34  ;;  %v3329_v3 = vrot.slane %v3891_v55, %v5093_v34  ;;  %v3345_v58 = vrot.slane %v3893_v39, %v5093_v34 }
 0x682   : > { %v3232_v18 = vrot.slane %v3218_v12, %v5095_v45  ;;  %v3264_v19 = vrot.slane %v3250_v40, %v5095_v45  ;;  %v5567_v1 = vrot.slane %v3217_v10, %v5095_v45  ;;  %v5570_v50 = vrot.slane %v3249_v13, %v5095_v45  ;;  %4142 = vmatpush3.bf16.msra.mxu0 %v4338_v5 }
 0x683   : > { %v2786_v20 = vpop.f32.mrb[44].mxu1  ;;  %v3354_v52 = vcombine.high %v3297_v15, %v3313_v16  ;;  %v3386_v25 = vcombine.high %v3329_v3, %v3345_v58  ;;  %v3353_v27 = vcombine.low %v3297_v15, %v3313_v16  ;;  %v3385_v46 = vcombine.low %v3329_v3, %v3345_v58  ;;  %4143 = vmatprep.subr.bf16.mxu0 %v4659_v4 }
 0x684   : > { %v4123_v38 = vpop.f32.mrb[45].mxu1  ;;  %v3283_v47 = vcombine.low %v3232_v18, %v3264_v19  ;;  %v3281_v6 = vcombine.low %v5567_v1, %v5570_v50  ;;  %v3282_v30 = vcombine.high %v5567_v1, %v5570_v50  ;;  %v3284_v37 = vcombine.high %v3232_v18, %v3264_v19 }
 0x685   : > { %v2789_v29 = vpop.f32.mrb[46].mxu1  ;;  %v3368_v44 = vrot.slane %v3354_v52, %v5095_v45  ;;  %v3400_v33 = vrot.slane %v3386_v25, %v5095_v45  ;;  %v5579_v42 = vrot.slane %v3353_v27, %v5095_v45  ;;  %v5582_v43 = vrot.slane %v3385_v46, %v5095_v45 }
 0x686   : > { %v4124_v8 = vpop.f32.mrb[47].mxu1  ;;  %4144 = vmatpush3.bf16.msra.mxu0 %v4339_v59 }
 0x687   : > { %v3419_v54 = vcombine.low %v3368_v44, %v3400_v33  ;;  %v3418_v41 = vcombine.high %v5579_v42, %v5582_v43  ;;  %v3417_v49 = vcombine.low %v5579_v42, %v5582_v43  ;;  %v3420_v11 = vcombine.high %v3368_v44, %v3400_v33  ;;  %4145 = vmatprep.subr.bf16.mxu0 %v4659_v4 }
 0x689   : > { %v4282_v48 = vpack.i.bf16 %v3419_v54, %v3283_v47  ;;  %v4277_v51 = vpack.i.bf16 %v3418_v41, %v3282_v30  ;;  %v4287_v31 = vpack.i.bf16 %v3420_v11, %v3284_v37 }
 0x68a   : > { %4146 = vmatpush3.bf16.msra.mxu0 %v4340_v0 }
 0x68b   : > { %4283 = vrot.lane.b32.xlu0 %v4282_v48, %s4667_s20  ;;  %4278 = vrot.lane.b32.xlu1 %v4277_v51, %s4666_s18  ;;  %v2830_v63 = vpop.f32.mrb[20].mxu0  ;;  %s3912_s18 = sshll.u32 %s5762_s24, 8  ;;  %s530_s20 = scalar_lea.vmem [#allocation14], %s3816_s8 }
 0x68c   : > { %v2913_v21 = vcombine.low %v5548_v35, %v2830_v63  ;;  %v2914_v24 = vcombine.high %v5548_v35, %v2830_v63  ;;  %v4129_v14 = vpop.f32.mrb[21].mxu0  ;;  %4147 = vmatprep.subr.bf16.mxu0 %v4659_v4  ;;  %s3678_s15 = sshll.u32 %s530_s20, 4  ;;  %s5663_s25 = scalar_lea.hbm %s5765_s19, %s3912_s18  ;;  %s5665_s15 = int_to_ptr.vmem [resolvable:$true] %s3678_s15 }
 0x68d   : > { %v2833_v17 = vpop.f32.mrb[22].mxu0  ;;  %v4341_v14 = vld [vmem:[#allocation13 + $0x28] sm:$0xff]   ;;  %s4670_s8 = smov [#allocation14]  }
 0x68e   : > { %v3049_v56 = vcombine.low %v5554_v26, %v2833_v17  ;;  %v3050_v57 = vcombine.high %v5554_v26, %v2833_v17  ;;  %v4130_v53 = vpop.f32.mrb[23].mxu0  ;;  %v2921_v28 = vrot.slane %v2913_v21, %v5093_v34  ;;  %v2928_v60 = vrot.slane %v2914_v24, %v5093_v34  ;;  %4148 = vmatpush3.bf16.msra.mxu0 %v4341_v14  ;;  %s4562_s24 = sshll.u32 %s4670_s8, 4  ;;  %s4563_s24 = int_to_ptr.vmem [resolvable:$false] %s4562_s24 }
 0x68f   : > { %4288 = vrot.lane.b32.xlu1 %v4287_v31, %s4664_s12  ;;  %4149 = vmatprep.subr.bf16.mxu0 %v4659_v4  ;;  %p4565_p3 = scmp.lt.s32.totalorder %s5665_s15, %s4563_s24 }
 0x690   : > { %v3057_v13 = vrot.slane %v3049_v56, %v5093_v34  ;;  %v3064_v15 = vrot.slane %v3050_v57, %v5093_v34 }
 0x693   : > { %v2874_v36 = vpop.f32.mrb[48].mxu1 }
 0x694   : > { %v2929_v35 = vcombine.low %v2786_v20, %v2874_v36  ;;  %v2930_v32 = vcombine.high %v2786_v20, %v2874_v36  ;;  %v4135_v2 = vpop.f32.mrb[49].mxu1 }
 0x695   : > { %v2877_v26 = vpop.f32.mrb[50].mxu1 }
 0x696   : > { %v2937_v61 = vrot.slane %v2929_v35, %v5093_v34  ;;  %v2944_v23 = vrot.slane %v2930_v32, %v5093_v34  ;;  %v3065_v7 = vcombine.low %v2789_v29, %v2877_v26  ;;  %v3066_v9 = vcombine.high %v2789_v29, %v2877_v26  ;;  %v4136_v55 = vpop.f32.mrb[51].mxu1 }
 0x698   : > { %v2977_v39 = vcombine.low %v2921_v28, %v2937_v61  ;;  %v2978_v12 = vcombine.high %v2921_v28, %v2937_v61  ;;  %v2993_v40 = vcombine.low %v2928_v60, %v2944_v23  ;;  %v2994_v10 = vcombine.high %v2928_v60, %v2944_v23 }
 0x699   : > { %v3073_v16 = vrot.slane %v3065_v7, %v5093_v34  ;;  %v3080_v3 = vrot.slane %v3066_v9, %v5093_v34 }
 0x69a   : > { %v2985_v58 = vrot.slane %v2977_v39, %v5095_v45  ;;  %v2992_v18 = vrot.slane %v2978_v12, %v5095_v45  ;;  %v3001_v19 = vrot.slane %v2993_v40, %v5095_v45  ;;  %v3008_v20 = vrot.slane %v2994_v10, %v5095_v45 }
 0x69b   : > { %v3113_v52 = vcombine.low %v3057_v13, %v3073_v16  ;;  %v3114_v25 = vcombine.high %v3057_v13, %v3073_v16  ;;  %v3129_v27 = vcombine.low %v3064_v15, %v3080_v3  ;;  %v3130_v46 = vcombine.high %v3064_v15, %v3080_v3 }
 0x69c   : > { %v3880_v38 = vcombine.low %v2985_v58, %v2992_v18  ;;  %v3882_v47 = vcombine.high %v2985_v58, %v2992_v18  ;;  %v3884_v30 = vcombine.low %v3001_v19, %v3008_v20  ;;  %v3886_v37 = vcombine.high %v3001_v19, %v3008_v20  ;;  %v4343_v19 = vld [vmem:[#allocation13 + $0x38] sm:$0xff]  }
 0x69d   : > { %v3121_v62 = vrot.slane %v3113_v52, %v5095_v45  ;;  %v3128_v29 = vrot.slane %v3114_v25, %v5095_v45  ;;  %v3137_v44 = vrot.slane %v3129_v27, %v5095_v45  ;;  %v3144_v33 = vrot.slane %v3130_v46, %v5095_v45 }
 0x69e   : > { %v3168_v8 = vrot.slane %v3880_v38, %v5093_v34  ;;  %v3184_v22 = vrot.slane %v3882_v47, %v5093_v34  ;;  %v3200_v54 = vrot.slane %v3884_v30, %v5093_v34  ;;  %v3216_v41 = vrot.slane %v3886_v37, %v5093_v34 }
 0x69f   : > { %v3888_v11 = vcombine.low %v3121_v62, %v3128_v29  ;;  %v3890_v48 = vcombine.high %v3121_v62, %v3128_v29  ;;  %v3892_v51 = vcombine.low %v3137_v44, %v3144_v33  ;;  %v3894_v31 = vcombine.high %v3137_v44, %v3144_v33 }
 0x6a0   : > { %v3234_v5 = vcombine.high %v3168_v8, %v3184_v22  ;;  %v3266_v63 = vcombine.high %v3200_v54, %v3216_v41  ;;  %v3233_v21 = vcombine.low %v3168_v8, %v3184_v22  ;;  %v3265_v24 = vcombine.low %v3200_v54, %v3216_v41 }
 0x6a1   : > { %v3304_v17 = vrot.slane %v3888_v11, %v5093_v34  ;;  %v3320_v56 = vrot.slane %v3890_v48, %v5093_v34  ;;  %v3336_v57 = vrot.slane %v3892_v51, %v5093_v34  ;;  %v3352_v53 = vrot.slane %v3894_v31, %v5093_v34  ;;  %v4342_v34 = vld [vmem:[#allocation13 + $0x30] sm:$0xff]  }
 0x6a2   : > { %v3248_v59 = vrot.slane %v3234_v5, %v5095_v45  ;;  %v3280_v0 = vrot.slane %v3266_v63, %v5095_v45  ;;  %v3241_v36 = vrot.slane %v3233_v21, %v5095_v45  ;;  %v3273_v35 = vrot.slane %v3265_v24, %v5095_v45  ;;  %4150 = vmatpush3.bf16.msra.mxu0 %v4342_v34 }
 0x6a3   : > { %v3370_v32 = vcombine.high %v3304_v17, %v3320_v56  ;;  %v3402_v2 = vcombine.high %v3336_v57, %v3352_v53  ;;  %v3369_v28 = vcombine.low %v3304_v17, %v3320_v56  ;;  %v3401_v60 = vcombine.low %v3336_v57, %v3352_v53  ;;  %4151 = vmatprep.subr.bf16.mxu0 %v4659_v4  ;;  %v3895_v57 = vld [vmem:[%s5761_s21] ss:$0 sm:$0xff]  ;;  %s3663_s21 = scalar_lea.sflag [#allocation7], %s4982_s23 }
 0x6a4   : > { %v3287_v26 = vcombine.low %v3248_v59, %v3280_v0  ;;  %v3285_v61 = vcombine.low %v3241_v36, %v3273_v35  ;;  %v3286_v23 = vcombine.high %v3241_v36, %v3273_v35  ;;  %v3288_v7 = vcombine.high %v3248_v59, %v3280_v0  ;;  %v3615_v59 = vld [vmem:[%s4988_s13] sm:$0xff] }
 0x6a5   : > { %v3384_v9 = vrot.slane %v3370_v32, %v5095_v45  ;;  %v3416_v55 = vrot.slane %v3402_v2, %v5095_v45  ;;  %v3377_v39 = vrot.slane %v3369_v28, %v5095_v45  ;;  %v3409_v12 = vrot.slane %v3401_v60, %v5095_v45  ;;  %v3616_v32 = vld [vmem:[%s4988_s13 + $0x8] sm:$0xff]  ;;  %s4558_s13 = scalar_lea.vmem %s5665_s15, 256 }
 0x6a6   : > { %4152 = vmatpush3.bf16.msra.mxu0 %v4343_v19  ;;  %p4559_p8 = scmp.ne.s32.totalorder %s5665_s15, %s4558_s13 }
 0x6a7   : > { %v3423_v40 = vcombine.low %v3384_v9, %v3416_v55  ;;  %v3421_v10 = vcombine.low %v3377_v39, %v3409_v12  ;;  %v3422_v13 = vcombine.high %v3377_v39, %v3409_v12  ;;  %v3424_v15 = vcombine.high %v3384_v9, %v3416_v55 }
 0x6a8   : > { %p4560_p6 = pnand %p4559_p8, %p4927_p5 }
 0x6a9   : > { %v4302_v16 = vpack.i.bf16 %v3423_v40, %v3287_v26  ;;  %v4292_v3 = vpack.i.bf16 %v3421_v10, %v3285_v61  ;;  %v4297_v58 = vpack.i.bf16 %v3422_v13, %v3286_v23  ;;  %v4307_v18 = vpack.i.bf16 %v3424_v15, %v3288_v7 }
 0x6aa   : > { %p4561_p10 = pneg %p4560_p6 }
 0x6ab   : > { %4303 = vrot.lane.b32.xlu0 %v4302_v16, %s4661_s17  ;;  %4293 = vrot.lane.b32.xlu1 %v4292_v3, %s4665_s16  ;;  %s5764_s16 = sld [smem:[#allocation27_spill]]  ;;  %s4564_s17 = scalar_lea.vmem %s4563_s24, 512 }
 0x6ac   : > { %p4566_p7 = scmp.lt.s32.totalorder %s4564_s17, %s4558_s13 }
 0x6ae   : > { %p4567_p9 = por %p4566_p7, %p4565_p3 }
 0x6af   : > { %4298 = vrot.lane.b32.xlu1 %v4297_v58, %s4663_s2 }
 0x6b0   : > { %p4568_p0 = pnand %p4567_p9, %p4561_p10 }
 0x6b3   : > { %4308 = vrot.lane.b32.xlu1 %v4307_v18, %s4662_s14  ;;  %s5763_s14 = sld [smem:[#allocation26_spill]] }
 0x6b9   : > { %v3904_v18 = vld [vmem:[%s5763_s14] ss:$0 sm:$0xff] }
 0x6fd   : > { %v4279_v45 = vpop.permute.xlu1 %4278  ;;  %v4284_v52 = vpop.permute.xlu0 %4283 }
 0x6fe   : > { %v4281_v25 = vunpack.i.h.bf16 %v4279_v45  ;;  %v4280_v27 = vunpack.i.l.bf16 %v4279_v45  ;;  %v4286_v4 = vunpack.i.h.bf16 %v4284_v52  ;;  %v4285_v46 = vunpack.i.l.bf16 %v4284_v52  ;;  %v3905_v45 = vld [vmem:[%s5764_s16] ss:$0 sm:$0xff] }
 0x700   : > { %v3481_v47 = vsel %vm1968_vm1, %v3281_v6, %v4280_v27  ;;  %v3482_v30 = vsel %vm1968_vm1, %v3417_v49, %v4281_v25 }
 0x701   : > { %v4289_v20 = vpop.permute.xlu1 %4288  ;;  %v3484_v33 = vsel %vm3483_vm2, %v3481_v47, %v4285_v46  ;;  %v3485_v8 = vsel %vm3483_vm2, %v3482_v30, %v4286_v4 }
 0x702   : > { %v4291_v37 = vunpack.i.h.bf16 %v4289_v20  ;;  %v4290_v62 = vunpack.i.l.bf16 %v4289_v20 }
 0x704   : > { %v3487_v54 = vsel %vm3486_vm3, %v3484_v33, %v4290_v62  ;;  %v3488_v41 = vsel %vm3486_vm3, %v3485_v8, %v4291_v37 }
 0x71d   : > { %v4294_v38 = vpop.permute.xlu1 %4293  ;;  %v4304_v1 = vpop.permute.xlu0 %4303 }
 0x71e   : > { %v4296_v29 = vunpack.i.h.bf16 %v4294_v38  ;;  %v4295_v44 = vunpack.i.l.bf16 %v4294_v38  ;;  %v4306_v49 = vunpack.i.h.bf16 %v4304_v1  ;;  %v4305_v51 = vunpack.i.l.bf16 %v4304_v1 }
 0x720   : > { %v3491_v11 = vsel %vm3489_vm4, %v3488_v41, %v4296_v29  ;;  %v3490_v48 = vsel %vm3489_vm4, %v3487_v54, %v4295_v44 }
 0x721   : > { %v4299_v22 = vpop.permute.xlu1 %4298 }
 0x722   : > { %v4301_v50 = vunpack.i.h.bf16 %v4299_v22  ;;  %v4300_v6 = vunpack.i.l.bf16 %v4299_v22 }
 0x724   : > { %v3493_v42 = vsel %vm3492_vm5, %v3490_v48, %v4300_v6  ;;  %v3494_v43 = vsel %vm3492_vm5, %v3491_v11, %v4301_v50 }
 0x725   : > { %v4309_v31 = vpop.permute.xlu1 %4308  ;;  %v3496_v21 = vsel %vm3495_vm6, %v3493_v42, %v4305_v51  ;;  %v3497_v24 = vsel %vm3495_vm6, %v3494_v43, %v4306_v49 }
 0x726   : > { %v4311_v5 = vunpack.i.h.bf16 %v4309_v31  ;;  %v4310_v63 = vunpack.i.l.bf16 %v4309_v31 }
 0x728   : > { %v3499_v14 = vsel %vm3498_vm7, %v3496_v21, %v4310_v63  ;;  %v3500_v17 = vsel %vm3498_vm7, %v3497_v24, %v4311_v5 }
 0x729   : > { %v3501_v56 = vpack.c.bf16 %v3500_v17, %v3499_v14 }
 0x72b   : > { %4154 = vmatmul.mubr.bf16.vlgmr.msra.gmra.mrb[24].mxu0 %v3501_v56 }
 0x7fe   : > { %v3607_v53 = vpop.f32.mrb[24].mxu0 }
 0x7ff   : > { %v3608_v0 = vadd.f32 %v3895_v57, %v3607_v53  ;;  %v4155_v36 = vpop.f32.mrb[25].mxu0 }
 0x800   : > { %v3610_v35 = vpop.f32.mrb[26].mxu0 }
 0x801   : > { %v3611_v2 = vadd.f32 %v3895_v57, %v3610_v35  ;;  %v4156_v28 = vpop.f32.mrb[27].mxu0  ;;  %v3617_v60 = vadd.f32 %v3615_v59, %v3608_v0 }
 0x803   : > { %3621 = vadd.xlane.f32.xlu0 %v3617_v60  ;;  %v3618_v26 = vadd.f32 %v3616_v32, %v3611_v2 }
 0x805   : > { %3623 = vadd.xlane.f32.xlu1 %v3618_v26 }
 0x890   : > { %v3622_v61 = vpop.xlane.xlu0 %3621 }
 0x891   : > { %v3626_v23 = vmul.f32 0.0078125, %v3622_v61 }
 0x892   : > { %v3624_v7 = vpop.xlane.xlu1 %3623 }
 0x893   : > { %v3628_v34 = vsub.f32 %v3617_v60, %v3626_v23  ;;  %v3627_v9 = vmul.f32 0.0078125, %v3624_v7 }
 0x895   : > { %v3629_v55 = vsub.f32 %v3618_v26, %v3627_v9  ;;  %v3630_v39 = vmul.f32 %v3628_v34, %v3628_v34 }
 0x897   : > { %3632 = vadd.xlane.f32.xlu0 %v3630_v39  ;;  %v3631_v12 = vmul.f32 %v3629_v55, %v3629_v55 }
 0x89b   : > { %3634 = vadd.xlane.f32.xlu0 %v3631_v12 }
 0x924   : > { %v3633_v40 = vpop.xlane.xlu0 %3632 }
 0x925   : > { %v3636_v10 = vmul.f32 0.0078125, %v3633_v40 }
 0x927   : > { %v3638_v13 = vadd.f32 1e-05, %v3636_v10 }
 0x928   : > { %v3635_v15 = vpop.xlane.xlu0 %3634 }
 0x929   : > { %4412 = vrsqrt.f32 %v3638_v13  ;;  %v3637_v16 = vmul.f32 0.0078125, %v3635_v15 }
 0x92b   : > { %v3639_v3 = vadd.f32 1e-05, %v3637_v16 }
 0x92d   : > { %4414 = vrsqrt.f32 %v3639_v3 }
 0x933   : > { %v4413_v58 = vpop.eup %4412 }
 0x934   : > { %v3642_v19 = vmul.f32 %v4413_v58, %v3628_v34 }
 0x936   : > { %v3650_v20 = vmul.f32 %v3904_v18, %v3642_v19 }
 0x937   : > { %v4415_v52 = vpop.eup %4414 }
 0x938   : > { %v3658_v25 = vadd.f32 %v3905_v45, %v3650_v20  ;;  %v3643_v27 = vmul.f32 %v4415_v52, %v3629_v55 }
 0x93a   : > { %v3651_v4 = vmul.f32 %v3904_v18, %v3643_v27  ;;  %3660 = vst [vmem:[%s530_s20] sm:$0xff] %v3658_v25 }
 0x93c   : > { %v3659_v46 = vadd.f32 %v3905_v45, %v3651_v4 }
 0x93e   : > { %3661 = vst [vmem:[%s530_s20 + $0x8] sm:$0xff] %v3659_v46 }
 0x93f   : > { %4571 = shalt.err (!%p4568_p0)
}
 0x940   : > { %s4572_s14 = scalar_lea.hbm %s5663_s25, 256  ;;  %s4576_s16 = scalar_lea.hbm %s5765_s19, 512 }
 0x941   : > { %p4573_p4 = scmp.ne.s32.totalorder %s5663_s25, %s4572_s14  ;;  %p4577_p12 = scmp.lt.u32.totalorder %s5663_s25, %s5765_s19 }
 0x942   : > { %p4578_p1 = scmp.lt.u32.totalorder %s4576_s16, %s4572_s14  ;;  %p4580_p8 = scmp.lt.u32.totalorder %s4572_s14, %s5663_s25 }
 0x943   : > { %p4574_p13 = pnand %p4573_p4, %p4927_p5 }
 0x944   : > { %p4579_p11 = por %p4578_p1, %p4577_p12 }
 0x945   : > { %p4575_p2 = pneg %p4574_p13 }
 0x946   : > { %p4581_p6 = por %p4580_p8, %p4579_p11 }
 0x948   : > { %p4582_p10 = pnand %p4581_p6, %p4575_p2 }
 0x94a   : > { %4585 = shalt.err (!%p4582_p10)
}
 0x94b   : > { %s4671_s11 = smov 128   ;;  %s4672_s22 = smov 8  }
 0x94c   : > { %4175 = dma.vmem_to_hbm [thread:$0]  (%p4927_p5), %s5665_s15, 256, %s5663_s25, %s3663_s21, %s4671_s11, %s4671_s11, %s4672_s22  }
 0x94d PF: > { %s5766_s13 = sld [smem:[#allocation19_spill]]  ;;  %s5767_s8 = sld [smem:[#allocation21_spill]] }
 0x94e   : > { %p5769_p7 = scmp.ge.s32.totalorder %s4648_s30, 2 }
 0x953   : > { %s3693_s24 = sand.u32 1, %s5766_s13   ;;  %p5768_p3 = scmp.ne.s32.totalorder %s5767_s8, 0 }
 0x954   : > { %s3694_s17 = scalar_lea.sflag [#allocation7], %s3693_s24 }
 0x955   : > { %p4195_p9 = pnand %p5769_p7, %p5768_p3 }
 0x957   : > { %4623 = dma.done.wait (!%p4195_p9), %s3694_s17, 256  }
 0x958   : > { %4625 = vsyncadd (!%p4195_p9), %s3694_s17, 4294967040  ;;  %s31_s30 = sadd.s32 1, %s4648_s30   ;;  %s5770_s4 = smov %s5777_s28 }
 0x959   : > { %p28_p0 = scmp.ge.s32.totalorder %s31_s30, 4   ;;  %s5771_s25 = smov %s4632_s26 }
 0x95a   : > { %s5772_s26 = smov %s4636_s27  ;;  %s5773_s27 = smov %s4936_s6 }
 0x95b   : > { %s5774_s28 = smov %s4644_s29  ;;  %s5775_s29 = smov %s5770_s4 }
 0x95c   :  { %30 = sbr.rel (!%p28_p0) target bundleno = 16 (0x10), region = 139 }
 0x963   :  { %3699 = vsyncpa [#allocation6], 1 }
 0x964   :  { %3701 = vsyncpa [#allocation6 + $0x1], 1 }
 0x965   :  { %3702 = vsyncpa [#allocation9], 1 }
 0x966   :  { %3703 = vsyncpa [#allocation12], 1 }
 0x967   :  { %3704 = vsyncpa [#allocation7], 1 }
 0x968   :  { %3706 = vsyncpa [#allocation7 + $0x1], 1 }

</bundles_post_ra>
